<compile_context>
chip_gen: v5e
topology: v5e:2x2
jax: 0.10.0
libtpu: 0.0.40
codegen_flags: <defaults>
</compile_context>

<pallas_src>
import functools

import numpy as np
import jax
import jax.numpy as jnp
from jax import lax
from jax.experimental import pallas as pl
from jax.experimental.pallas import tpu as pltpu

NEG_SLOPE = 0.01             # nn.LeakyReLU default
EPS = 1e-5                   # nn.BatchNorm2d default
VMEM_LIMIT = 32 * 1024 * 1024


# ---------------------------------------------------------------------------
# Host-side (runs once) weight / helper-matrix packing.
# ---------------------------------------------------------------------------
def _make_banded_weights(w_hwio, width):
    """(3,3,Cin,Cout) HWIO -> (3, W*Cin, W*Cout) block-banded matrices.

    out_flat[r, wo*Cout+co] = sum_dy xpadH[r+dy, :] @ M[dy] reproduces the SAME-padded
    3x3 conv; W-padding is implicit (missing band blocks are zero)."""
    w = np.asarray(w_hwio, np.float32)
    kh, kw, cin, cout = w.shape
    m = np.zeros((kh, width * cin, width * cout), np.float32)
    for dy in range(kh):
        for dx in range(kw):
            for wo in range(width):
                wi = wo + dx - 1
                if 0 <= wi < width:
                    m[dy, wi * cin:(wi + 1) * cin, wo * cout:(wo + 1) * cout] = w[dy, dx]
    return jnp.asarray(m)


def _make_residual_selector(cin, cout, width):
    """0/1 matrix mapping the lane-flattened (W*Cin) input onto the first
    min(Cin, Cout) output channels of the lane-flattened (W*Cout) layout."""
    mch = min(cin, cout)
    e = np.zeros((width * cin, width * cout), np.float32)
    for w in range(width):
        for c in range(mch):
            e[w * cin + c, w * cout + c] = 1.0
    return jnp.asarray(e)


def _make_channel_reduce(cout, width):
    """0/1 matrix: (1, W*Cout) per-lane row-sums @ R -> per-CHANNEL sums, already
    tiled over W on the lanes (so BN scale/shift stay lane-dense)."""
    r = np.zeros((width * cout, width * cout), np.float32)
    for c in range(cout):
        for w_src in range(width):
            for w_dst in range(width):
                r[w_src * cout + c, w_dst * cout + c] = 1.0
    return jnp.asarray(r)


# ---------------------------------------------------------------------------
# Fused ConvBlock kernel (single grid step, whole batch stacked into M).
# ---------------------------------------------------------------------------
def _convblock_kernel(x_ref, mask_ref, m1_ref, b1_ref, g1_ref, be1_ref,
                      m2_ref, b2_ref, g2_ref, be2_ref, r_ref, e_ref,
                      o_ref, xpad_ref, a1pad_ref, *, inv_cnt):
    # x_ref    : (N, H, W*Cin)        lane-dense input slab
    # mask_ref : (N*(H+2)-2, W*Cout)  1.0 on valid image rows, 0.0 on halo/garbage rows
    # m1/m2    : (3, W*Cin, W*Cout) / (3, W*Cout, W*Cout) block-banded conv weights
    # b/g/be   : (1, W*Cout)          bias / BN gamma / BN beta, tiled over W
    # r_ref    : (W*Cout, W*Cout)     channel-collapse matrix for BN stats
    # e_ref    : (W*Cin, W*Cout)      residual selector
    # o_ref    : (N, H, W*Cout)
    # xpad_ref : (N*(H+2), W*Cin)     batch-stacked, H-padded input (VMEM scratch)
    # a1pad_ref: (N*(H+2), W*Cout)    batch-stacked, H-padded post-BN1 activation
    n_img, h, wcin = x_ref.shape
    wcout = o_ref.shape[2]
    p = h + 2
    npad = n_img * p
    ncore = npad - 2

    # ---- stack the batch into one H-padded slab (only halo rows are zero-stored) ----
    zin = jnp.zeros((1, wcin), jnp.float32)
    for img in range(n_img):
        base = img * p
        xpad_ref[base:base + 1, :] = zin
        xpad_ref[base + p - 1:base + p, :] = zin
        xpad_ref[base + 1:base + 1 + h, :] = x_ref[img]

    xpad = xpad_ref[...]
    mask = mask_ref[...]

    # ---- conv1: 3 banded MXU matmuls over the whole stacked batch ----
    acc1 = jnp.zeros((ncore, wcout), jnp.float32)
    for dy in range(3):
        acc1 = acc1 + jnp.dot(xpad[dy:dy + ncore, :], m1_ref[dy],
                              preferred_element_type=jnp.float32)
    y1 = (acc1 + b1_ref[...]) * mask

    # ---- BN1 (training-mode batch stats, two-pass mean / centered variance) ----
    s1 = jnp.sum(y1, axis=0, keepdims=True)
    mean1 = jnp.dot(s1, r_ref[...], preferred_element_type=jnp.float32) * inv_cnt
    c1 = (y1 - mean1) * mask
    q1 = jnp.sum(c1 * c1, axis=0, keepdims=True)
    var1 = jnp.dot(q1, r_ref[...], preferred_element_type=jnp.float32) * inv_cnt
    scale1 = g1_ref[...] * lax.rsqrt(var1 + EPS)
    t1 = c1 * scale1 + be1_ref[...]
    a1 = jnp.where(t1 >= 0, t1, NEG_SLOPE * t1) * mask        # fused BN1 + LeakyReLU

    zout = jnp.zeros((1, wcout), jnp.float32)
    a1pad_ref[0:1, :] = zout
    a1pad_ref[npad - 1:npad, :] = zout
    a1pad_ref[1:npad - 1, :] = a1                              # interior halos already 0
    a1p = a1pad_ref[...]

    # ---- conv2 ----
    acc2 = jnp.zeros((ncore, wcout), jnp.float32)
    for dy in range(3):
        acc2 = acc2 + jnp.dot(a1p[dy:dy + ncore, :], m2_ref[dy],
                              preferred_element_type=jnp.float32)
    y2 = (acc2 + b2_ref[...]) * mask

    # ---- BN2 ----
    s2 = jnp.sum(y2, axis=0, keepdims=True)
    mean2 = jnp.dot(s2, r_ref[...], preferred_element_type=jnp.float32) * inv_cnt
    c2 = (y2 - mean2) * mask
    q2 = jnp.sum(c2 * c2, axis=0, keepdims=True)
    var2 = jnp.dot(q2, r_ref[...], preferred_element_type=jnp.float32) * inv_cnt
    scale2 = g2_ref[...] * lax.rsqrt(var2 + EPS)

    # ---- BN2 apply + residual (0/1 selector matmul, no padded residual tensor) + act ----
    z = c2 * scale2 + be2_ref[...] + jnp.dot(xpad[1:npad - 1, :], e_ref[...],
                                             preferred_element_type=jnp.float32)
    zact = jnp.where(z >= 0, z, NEG_SLOPE * z)

    for img in range(n_img):
        o_ref[img] = zact[img * p:img * p + h, :]


# ---------------------------------------------------------------------------
# ConvBlock forward (defaults: batch norm, residual, leakyrelu, no dropout)
# ---------------------------------------------------------------------------
def conv_block_forward(x_nchw, params):
    w1, b1, g1, be1, w2, b2, g2, be2 = params
    x = jnp.transpose(x_nchw, (0, 2, 3, 1)).astype(jnp.float32)    # NCHW -> NHWC
    n, h, w, cin = x.shape
    cout = w1.shape[-1]
    wcin, wcout = w * cin, w * cout
    p = h + 2
    npad = n * p
    ncore = npad - 2

    x_flat = x.reshape(n, h, wcin)                                 # lane-dense slab
    m1 = _make_banded_weights(w1, w)
    m2 = _make_banded_weights(w2, w)
    e_res = _make_residual_selector(cin, cout, w)
    r_red = _make_channel_reduce(cout, w)

    def tile_c(v):
        return jnp.tile(v.astype(jnp.float32), w).reshape(1, wcout)

    b1f, g1f, be1f = tile_c(b1), tile_c(g1), tile_c(be1)
    b2f, g2f, be2f = tile_c(b2), tile_c(g2), tile_c(be2)

    mask_np = np.zeros((ncore, 1), np.float32)
    for i in range(n):
        mask_np[i * p:i * p + h, 0] = 1.0                          # valid rows of the stack
    mask = jnp.asarray(np.repeat(mask_np, wcout, axis=1))

    kernel = functools.partial(_convblock_kernel, inv_cnt=1.0 / float(n * h * w))

    out_flat = pl.pallas_call(
        kernel,
        out_shape=jax.ShapeDtypeStruct((n, h, wcout), jnp.float32),
        grid_spec=pltpu.PrefetchScalarGridSpec(
            num_scalar_prefetch=0,
            grid=(1,),                                             # whole block fits VMEM
            in_specs=[
                pl.BlockSpec((n, h, wcin), lambda i: (0, 0, 0)),
                pl.BlockSpec((ncore, wcout), lambda i: (0, 0)),
                pl.BlockSpec((3, wcin, wcout), lambda i: (0, 0, 0)),
                pl.BlockSpec((1, wcout), lambda i: (0, 0)),
                pl.BlockSpec((1, wcout), lambda i: (0, 0)),
                pl.BlockSpec((1, wcout), lambda i: (0, 0)),
                pl.BlockSpec((3, wcout, wcout), lambda i: (0, 0, 0)),
                pl.BlockSpec((1, wcout), lambda i: (0, 0)),
                pl.BlockSpec((1, wcout), lambda i: (0, 0)),
                pl.BlockSpec((1, wcout), lambda i: (0, 0)),
                pl.BlockSpec((wcout, wcout), lambda i: (0, 0)),
                pl.BlockSpec((wcin, wcout), lambda i: (0, 0)),
            ],
            out_specs=pl.BlockSpec((n, h, wcout), lambda i: (0, 0, 0)),
            scratch_shapes=[pltpu.VMEM((npad, wcin), jnp.float32),
                            pltpu.VMEM((npad, wcout), jnp.float32)]),
        compiler_params=pltpu.CompilerParams(
            dimension_semantics=("arbitrary",),
            vmem_limit_bytes=VMEM_LIMIT),
    )(x_flat, mask, m1, b1f, g1f, be1f, m2, b2f, g2f, be2f, r_red, e_res)

    out = out_flat.reshape(n, h, w, cout)
    return jnp.transpose(out, (0, 3, 1, 2))                        # NHWC -> NCHW


# ---------------------------------------------------------------------------
# Pure-JAX reference (same math) for a correctness sanity check.
# ---------------------------------------------------------------------------
def conv_block_reference(x_nchw, params):
    w1, b1, g1, be1, w2, b2, g2, be2 = params
    x = jnp.transpose(x_nchw, (0, 2, 3, 1)).astype(jnp.float32)

    def conv(v, wgt, b):
        y = lax.conv_general_dilated(
            v, wgt, window_strides=(1, 1), padding='SAME',
            dimension_numbers=('NHWC', 'HWIO', 'NHWC'))
        return y + b[None, None, None, :]

    def bn(v, gamma, beta):
        mean = jnp.mean(v, axis=(0, 1, 2))
        var = jnp.mean((v - mean) ** 2, axis=(0, 1, 2))            # biased var (BN training)
        return (v - mean) * lax.rsqrt(var + EPS) * gamma + beta

    lrelu = lambda v: jnp.where(v >= 0, v, NEG_SLOPE * v)

    hdn = lrelu(bn(conv(x, w1, b1), g1, be1))
    hdn = bn(conv(hdn, w2, b2), g2, be2)
    m = min(x.shape[-1], hdn.shape[-1])
    hdn = hdn.at[..., :m].add(x[..., :m])
    hdn = lrelu(hdn)
    return jnp.transpose(hdn, (0, 3, 1, 2))


if __name__ == "__main__":
    N, Cin, Cout, H, W = 2, 4, 8, 16, 16

    key = jax.random.PRNGKey(0)
    k1, k2, k3, k4, k5 = jax.random.split(key, 5)
    # Deterministic synthetic parameters (HWIO conv weights, BN gamma=1 / beta=0).
    w1 = jax.random.normal(k1, (3, 3, Cin, Cout), jnp.float32) * 0.1
    b1 = jax.random.normal(k2, (Cout,), jnp.float32) * 0.1
    w2 = jax.random.normal(k3, (3, 3, Cout, Cout), jnp.float32) * 0.1
    b2 = jax.random.normal(k4, (Cout,), jnp.float32) * 0.1
    g1 = jnp.ones((Cout,), jnp.float32)
    be1 = jnp.zeros((Cout,), jnp.float32)
    g2 = jnp.ones((Cout,), jnp.float32)
    be2 = jnp.zeros((Cout,), jnp.float32)
    params = (w1, b1, g1, be1, w2, b2, g2, be2)

    x = jax.random.normal(k5, (N, Cin, H, W), jnp.float32)         # NCHW like PyTorch

    out = conv_block_forward(x, params)
    out = jax.block_until_ready(out)

    ref = conv_block_reference(x, params)
    assert out.shape == (N, Cout, H, W)
    assert jnp.max(jnp.abs(out - ref)) < 1e-4, "Pallas ConvBlock mismatch vs reference"

    print("KERNEL_OK")
</pallas_src>

<mosaic_0001>
module attributes {stable_mosaic.version = 11 : i64} {
  func.func @_convblock_kernel(%arg0: i32, %arg1: memref<2x16x64xf32, #tpu.memory_space<vmem>>, %arg2: memref<34x128xf32, #tpu.memory_space<vmem>>, %arg3: memref<3x64x128xf32, #tpu.memory_space<vmem>>, %arg4: memref<1x128xf32, #tpu.memory_space<vmem>>, %arg5: memref<1x128xf32, #tpu.memory_space<vmem>>, %arg6: memref<1x128xf32, #tpu.memory_space<vmem>>, %arg7: memref<3x128x128xf32, #tpu.memory_space<vmem>>, %arg8: memref<1x128xf32, #tpu.memory_space<vmem>>, %arg9: memref<1x128xf32, #tpu.memory_space<vmem>>, %arg10: memref<1x128xf32, #tpu.memory_space<vmem>>, %arg11: memref<128x128xf32, #tpu.memory_space<vmem>>, %arg12: memref<64x128xf32, #tpu.memory_space<vmem>>, %arg13: memref<2x16x128xf32, #tpu.memory_space<vmem>>, %arg14: memref<36x64xf32, #tpu.memory_space<vmem>>, %arg15: memref<36x128xf32, #tpu.memory_space<vmem>>) attributes {dimension_semantics = [#tpu.dimension_semantics<arbitrary>], iteration_bounds = array<i64: 1>, scalar_prefetch = 0 : i64, scratch_operands = 2 : i64, tpu.core_type = #tpu.core_type<tc>, window_params = [{pipeline_mode = #tpu.pipeline_mode<synchronous>, transform_indices = @transform_0, window_bounds = array<i64: 2, 16, 64>}, {pipeline_mode = #tpu.pipeline_mode<synchronous>, transform_indices = @transform_1, window_bounds = array<i64: 34, 128>}, {pipeline_mode = #tpu.pipeline_mode<synchronous>, transform_indices = @transform_2, window_bounds = array<i64: 3, 64, 128>}, {pipeline_mode = #tpu.pipeline_mode<synchronous>, transform_indices = @transform_3, window_bounds = array<i64: 1, 128>}, {pipeline_mode = #tpu.pipeline_mode<synchronous>, transform_indices = @transform_4, window_bounds = array<i64: 1, 128>}, {pipeline_mode = #tpu.pipeline_mode<synchronous>, transform_indices = @transform_5, window_bounds = array<i64: 1, 128>}, {pipeline_mode = #tpu.pipeline_mode<synchronous>, transform_indices = @transform_6, window_bounds = array<i64: 3, 128, 128>}, {pipeline_mode = #tpu.pipeline_mode<synchronous>, transform_indices = @transform_7, window_bounds = array<i64: 1, 128>}, {pipeline_mode = #tpu.pipeline_mode<synchronous>, transform_indices = @transform_8, window_bounds = array<i64: 1, 128>}, {pipeline_mode = #tpu.pipeline_mode<synchronous>, transform_indices = @transform_9, window_bounds = array<i64: 1, 128>}, {pipeline_mode = #tpu.pipeline_mode<synchronous>, transform_indices = @transform_10, window_bounds = array<i64: 128, 128>}, {pipeline_mode = #tpu.pipeline_mode<synchronous>, transform_indices = @transform_11, window_bounds = array<i64: 64, 128>}, {pipeline_mode = #tpu.pipeline_mode<synchronous>, transform_indices = @transform_12, window_bounds = array<i64: 2, 16, 128>}]} {
    %cst = arith.constant 0.000000e+00 : f32
    %0 = vector.broadcast %cst : f32 to vector<1x64xf32>
    %c0 = arith.constant 0 : index
    %c0_0 = arith.constant 0 : index
    %1 = vector.load %arg14[%c0, %c0_0] : memref<36x64xf32, #tpu.memory_space<vmem>>, vector<1x64xf32>
    tpu.vector_store %arg14[%c0, %c0_0], %0 {strides = array<i32>} : memref<36x64xf32, #tpu.memory_space<vmem>>, vector<1x64xf32>,
    %c17 = arith.constant 17 : index
    %c0_1 = arith.constant 0 : index
    %2 = vector.load %arg14[%c17, %c0_1] : memref<36x64xf32, #tpu.memory_space<vmem>>, vector<1x64xf32>
    tpu.vector_store %arg14[%c17, %c0_1], %0 {strides = array<i32>} : memref<36x64xf32, #tpu.memory_space<vmem>>, vector<1x64xf32>,
    %c0_2 = arith.constant 0 : index
    %c0_3 = arith.constant 0 : index
    %c0_4 = arith.constant 0 : index
    %3 = vector.load %arg1[%c0_2, %c0_3, %c0_4] : memref<2x16x64xf32, #tpu.memory_space<vmem>>, vector<1x16x64xf32>
    %4 = vector.shape_cast %3 : vector<1x16x64xf32> to vector<16x64xf32>
    %c1 = arith.constant 1 : index
    %c0_5 = arith.constant 0 : index
    %5 = vector.load %arg14[%c1, %c0_5] : memref<36x64xf32, #tpu.memory_space<vmem>>, vector<16x64xf32>
    tpu.vector_store %arg14[%c1, %c0_5], %4 {strides = array<i32>} : memref<36x64xf32, #tpu.memory_space<vmem>>, vector<16x64xf32>,
    %c18 = arith.constant 18 : index
    %c0_6 = arith.constant 0 : index
    %6 = vector.load %arg14[%c18, %c0_6] : memref<36x64xf32, #tpu.memory_space<vmem>>, vector<1x64xf32>
    tpu.vector_store %arg14[%c18, %c0_6], %0 {strides = array<i32>} : memref<36x64xf32, #tpu.memory_space<vmem>>, vector<1x64xf32>,
    %c35 = arith.constant 35 : index
    %c0_7 = arith.constant 0 : index
    %7 = vector.load %arg14[%c35, %c0_7] : memref<36x64xf32, #tpu.memory_space<vmem>>, vector<1x64xf32>
    tpu.vector_store %arg14[%c35, %c0_7], %0 {strides = array<i32>} : memref<36x64xf32, #tpu.memory_space<vmem>>, vector<1x64xf32>,
    %c1_8 = arith.constant 1 : index
    %c0_9 = arith.constant 0 : index
    %c0_10 = arith.constant 0 : index
    %8 = vector.load %arg1[%c1_8, %c0_9, %c0_10] : memref<2x16x64xf32, #tpu.memory_space<vmem>>, vector<1x16x64xf32>
    %9 = vector.shape_cast %8 : vector<1x16x64xf32> to vector<16x64xf32>
    %c19 = arith.constant 19 : index
    %c0_11 = arith.constant 0 : index
    %10 = vector.load %arg14[%c19, %c0_11] : memref<36x64xf32, #tpu.memory_space<vmem>>, vector<16x64xf32>
    tpu.vector_store %arg14[%c19, %c0_11], %9 {strides = array<i32>} : memref<36x64xf32, #tpu.memory_space<vmem>>, vector<16x64xf32>,
    %c0_12 = arith.constant 0 : index
    %c0_13 = arith.constant 0 : index
    %11 = vector.load %arg14[%c0_12, %c0_13] : memref<36x64xf32, #tpu.memory_space<vmem>>, vector<36x64xf32>
    %c0_14 = arith.constant 0 : index
    %c0_15 = arith.constant 0 : index
    %12 = vector.load %arg2[%c0_14, %c0_15] : memref<34x128xf32, #tpu.memory_space<vmem>>, vector<34x128xf32>
    %cst_16 = arith.constant 0.000000e+00 : f32
    %13 = vector.broadcast %cst_16 : f32 to vector<34x128xf32>
    %14 = vector.extract_strided_slice %11 {offsets = [0, 0], sizes = [34, 64], strides = [1, 1]} : vector<36x64xf32> to vector<34x64xf32>
    %c0_17 = arith.constant 0 : index
    %c0_18 = arith.constant 0 : index
    %c0_19 = arith.constant 0 : index
    %15 = vector.load %arg3[%c0_17, %c0_18, %c0_19] : memref<3x64x128xf32, #tpu.memory_space<vmem>>, vector<1x64x128xf32>
    %16 = vector.shape_cast %15 : vector<1x64x128xf32> to vector<64x128xf32>
    %cst_20 = arith.constant dense<0.000000e+00> : vector<34x128xf32>
    %17 = tpu.matmul %14, %16, %cst_20 {dimension_numbers = #tpu.dot_dimension_numbers<[1], [0], [0], [1], [0, 0, 1, 1], [], []>} : vector<34x64xf32>, vector<64x128xf32>, vector<34x128xf32> -> vector<34x128xf32>
    %18 = arith.addf %13, %17 : vector<34x128xf32>
    %19 = vector.extract_strided_slice %11 {offsets = [1, 0], sizes = [34, 64], strides = [1, 1]} : vector<36x64xf32> to vector<34x64xf32>
    %c1_21 = arith.constant 1 : index
    %c0_22 = arith.constant 0 : index
    %c0_23 = arith.constant 0 : index
    %20 = vector.load %arg3[%c1_21, %c0_22, %c0_23] : memref<3x64x128xf32, #tpu.memory_space<vmem>>, vector<1x64x128xf32>
    %21 = vector.shape_cast %20 : vector<1x64x128xf32> to vector<64x128xf32>
    %cst_24 = arith.constant dense<0.000000e+00> : vector<34x128xf32>
    %22 = tpu.matmul %19, %21, %cst_24 {dimension_numbers = #tpu.dot_dimension_numbers<[1], [0], [0], [1], [0, 0, 1, 1], [], []>} : vector<34x64xf32>, vector<64x128xf32>, vector<34x128xf32> -> vector<34x128xf32>
    %23 = arith.addf %18, %22 : vector<34x128xf32>
    %24 = vector.extract_strided_slice %11 {offsets = [2, 0], sizes = [34, 64], strides = [1, 1]} : vector<36x64xf32> to vector<34x64xf32>
    %c2 = arith.constant 2 : index
    %c0_25 = arith.constant 0 : index
    %c0_26 = arith.constant 0 : index
    %25 = vector.load %arg3[%c2, %c0_25, %c0_26] : memref<3x64x128xf32, #tpu.memory_space<vmem>>, vector<1x64x128xf32>
    %26 = vector.shape_cast %25 : vector<1x64x128xf32> to vector<64x128xf32>
    %cst_27 = arith.constant dense<0.000000e+00> : vector<34x128xf32>
    %27 = tpu.matmul %24, %26, %cst_27 {dimension_numbers = #tpu.dot_dimension_numbers<[1], [0], [0], [1], [0, 0, 1, 1], [], []>} : vector<34x64xf32>, vector<64x128xf32>, vector<34x128xf32> -> vector<34x128xf32>
    %28 = arith.addf %23, %27 : vector<34x128xf32>
    %c0_28 = arith.constant 0 : index
    %c0_29 = arith.constant 0 : index
    %29 = vector.load %arg4[%c0_28, %c0_29] : memref<1x128xf32, #tpu.memory_space<vmem>>, vector<1x128xf32>
    %30 = vector.broadcast %29 : vector<1x128xf32> to vector<34x128xf32>
    %31 = arith.addf %28, %30 : vector<34x128xf32>
    %32 = arith.mulf %31, %12 : vector<34x128xf32>
    %cst_30 = arith.constant dense<0.000000e+00> : vector<128xf32>
    %33 = vector.multi_reduction <add>, %32, %cst_30 [0] : vector<34x128xf32> to vector<128xf32>
    %34 = vector.shape_cast %33 : vector<128xf32> to vector<1x128xf32>
    %c0_31 = arith.constant 0 : index
    %c0_32 = arith.constant 0 : index
    %35 = vector.load %arg11[%c0_31, %c0_32] : memref<128x128xf32, #tpu.memory_space<vmem>>, vector<128x128xf32>
    %cst_33 = arith.constant dense<0.000000e+00> : vector<1x128xf32>
    %36 = tpu.matmul %34, %35, %cst_33 {dimension_numbers = #tpu.dot_dimension_numbers<[1], [0], [0], [1], [0, 0, 1, 1], [], []>} : vector<1x128xf32>, vector<128x128xf32>, vector<1x128xf32> -> vector<1x128xf32>
    %cst_34 = arith.constant 0.001953125 : f32
    %37 = vector.broadcast %cst_34 : f32 to vector<1x128xf32>
    %38 = arith.mulf %36, %37 : vector<1x128xf32>
    %39 = vector.broadcast %38 : vector<1x128xf32> to vector<34x128xf32>
    %40 = arith.subf %32, %39 : vector<34x128xf32>
    %41 = arith.mulf %40, %12 : vector<34x128xf32>
    %42 = arith.mulf %41, %41 : vector<34x128xf32>
    %cst_35 = arith.constant dense<0.000000e+00> : vector<128xf32>
    %43 = vector.multi_reduction <add>, %42, %cst_35 [0] : vector<34x128xf32> to vector<128xf32>
    %44 = vector.shape_cast %43 : vector<128xf32> to vector<1x128xf32>
    %c0_36 = arith.constant 0 : index
    %c0_37 = arith.constant 0 : index
    %45 = vector.load %arg11[%c0_36, %c0_37] : memref<128x128xf32, #tpu.memory_space<vmem>>, vector<128x128xf32>
    %cst_38 = arith.constant dense<0.000000e+00> : vector<1x128xf32>
    %46 = tpu.matmul %44, %45, %cst_38 {dimension_numbers = #tpu.dot_dimension_numbers<[1], [0], [0], [1], [0, 0, 1, 1], [], []>} : vector<1x128xf32>, vector<128x128xf32>, vector<1x128xf32> -> vector<1x128xf32>
    %cst_39 = arith.constant 0.001953125 : f32
    %47 = vector.broadcast %cst_39 : f32 to vector<1x128xf32>
    %48 = arith.mulf %46, %47 : vector<1x128xf32>
    %c0_40 = arith.constant 0 : index
    %c0_41 = arith.constant 0 : index
    %49 = vector.load %arg5[%c0_40, %c0_41] : memref<1x128xf32, #tpu.memory_space<vmem>>, vector<1x128xf32>
    %cst_42 = arith.constant 9.99999974E-6 : f32
    %50 = vector.broadcast %cst_42 : f32 to vector<1x128xf32>
    %51 = arith.addf %48, %50 : vector<1x128xf32>
    %52 = math.rsqrt %51 : vector<1x128xf32>
    %53 = arith.mulf %49, %52 : vector<1x128xf32>
    %54 = vector.broadcast %53 : vector<1x128xf32> to vector<34x128xf32>
    %55 = arith.mulf %41, %54 : vector<34x128xf32>
    %c0_43 = arith.constant 0 : index
    %c0_44 = arith.constant 0 : index
    %56 = vector.load %arg6[%c0_43, %c0_44] : memref<1x128xf32, #tpu.memory_space<vmem>>, vector<1x128xf32>
    %57 = vector.broadcast %56 : vector<1x128xf32> to vector<34x128xf32>
    %58 = arith.addf %55, %57 : vector<34x128xf32>
    %cst_45 = arith.constant 0.000000e+00 : f32
    %59 = vector.broadcast %cst_45 : f32 to vector<34x128xf32>
    %60 = arith.cmpf oge, %58, %59 : vector<34x128xf32>
    %cst_46 = arith.constant 0.00999999977 : f32
    %61 = vector.broadcast %cst_46 : f32 to vector<34x128xf32>
    %62 = arith.mulf %61, %58 : vector<34x128xf32>
    %63 = arith.select %60, %58, %62 : vector<34x128xi1>, vector<34x128xf32>
    %64 = arith.mulf %63, %12 : vector<34x128xf32>
    %cst_47 = arith.constant 0.000000e+00 : f32
    %65 = vector.broadcast %cst_47 : f32 to vector<1x128xf32>
    %c0_48 = arith.constant 0 : index
    %c0_49 = arith.constant 0 : index
    %66 = vector.load %arg15[%c0_48, %c0_49] : memref<36x128xf32, #tpu.memory_space<vmem>>, vector<1x128xf32>
    tpu.vector_store %arg15[%c0_48, %c0_49], %65 {strides = array<i32>} : memref<36x128xf32, #tpu.memory_space<vmem>>, vector<1x128xf32>,
    %c35_50 = arith.constant 35 : index
    %c0_51 = arith.constant 0 : index
    %67 = vector.load %arg15[%c35_50, %c0_51] : memref<36x128xf32, #tpu.memory_space<vmem>>, vector<1x128xf32>
    tpu.vector_store %arg15[%c35_50, %c0_51], %65 {strides = array<i32>} : memref<36x128xf32, #tpu.memory_space<vmem>>, vector<1x128xf32>,
    %c1_52 = arith.constant 1 : index
    %c0_53 = arith.constant 0 : index
    %68 = vector.load %arg15[%c1_52, %c0_53] : memref<36x128xf32, #tpu.memory_space<vmem>>, vector<34x128xf32>
    tpu.vector_store %arg15[%c1_52, %c0_53], %64 {strides = array<i32>} : memref<36x128xf32, #tpu.memory_space<vmem>>, vector<34x128xf32>,
    %c0_54 = arith.constant 0 : index
    %c0_55 = arith.constant 0 : index
    %69 = vector.load %arg15[%c0_54, %c0_55] : memref<36x128xf32, #tpu.memory_space<vmem>>, vector<36x128xf32>
    %cst_56 = arith.constant 0.000000e+00 : f32
    %70 = vector.broadcast %cst_56 : f32 to vector<34x128xf32>
    %71 = vector.extract_strided_slice %69 {offsets = [0, 0], sizes = [34, 128], strides = [1, 1]} : vector<36x128xf32> to vector<34x128xf32>
    %c0_57 = arith.constant 0 : index
    %c0_58 = arith.constant 0 : index
    %c0_59 = arith.constant 0 : index
    %72 = vector.load %arg7[%c0_57, %c0_58, %c0_59] : memref<3x128x128xf32, #tpu.memory_space<vmem>>, vector<1x128x128xf32>
    %73 = vector.shape_cast %72 : vector<1x128x128xf32> to vector<128x128xf32>
    %cst_60 = arith.constant dense<0.000000e+00> : vector<34x128xf32>
    %74 = tpu.matmul %71, %73, %cst_60 {dimension_numbers = #tpu.dot_dimension_numbers<[1], [0], [0], [1], [0, 0, 1, 1], [], []>} : vector<34x128xf32>, vector<128x128xf32>, vector<34x128xf32> -> vector<34x128xf32>
    %75 = arith.addf %70, %74 : vector<34x128xf32>
    %76 = vector.extract_strided_slice %69 {offsets = [1, 0], sizes = [34, 128], strides = [1, 1]} : vector<36x128xf32> to vector<34x128xf32>
    %c1_61 = arith.constant 1 : index
    %c0_62 = arith.constant 0 : index
    %c0_63 = arith.constant 0 : index
    %77 = vector.load %arg7[%c1_61, %c0_62, %c0_63] : memref<3x128x128xf32, #tpu.memory_space<vmem>>, vector<1x128x128xf32>
    %78 = vector.shape_cast %77 : vector<1x128x128xf32> to vector<128x128xf32>
    %cst_64 = arith.constant dense<0.000000e+00> : vector<34x128xf32>
    %79 = tpu.matmul %76, %78, %cst_64 {dimension_numbers = #tpu.dot_dimension_numbers<[1], [0], [0], [1], [0, 0, 1, 1], [], []>} : vector<34x128xf32>, vector<128x128xf32>, vector<34x128xf32> -> vector<34x128xf32>
    %80 = arith.addf %75, %79 : vector<34x128xf32>
    %81 = vector.extract_strided_slice %69 {offsets = [2, 0], sizes = [34, 128], strides = [1, 1]} : vector<36x128xf32> to vector<34x128xf32>
    %c2_65 = arith.constant 2 : index
    %c0_66 = arith.constant 0 : index
    %c0_67 = arith.constant 0 : index
    %82 = vector.load %arg7[%c2_65, %c0_66, %c0_67] : memref<3x128x128xf32, #tpu.memory_space<vmem>>, vector<1x128x128xf32>
    %83 = vector.shape_cast %82 : vector<1x128x128xf32> to vector<128x128xf32>
    %cst_68 = arith.constant dense<0.000000e+00> : vector<34x128xf32>
    %84 = tpu.matmul %81, %83, %cst_68 {dimension_numbers = #tpu.dot_dimension_numbers<[1], [0], [0], [1], [0, 0, 1, 1], [], []>} : vector<34x128xf32>, vector<128x128xf32>, vector<34x128xf32> -> vector<34x128xf32>
    %85 = arith.addf %80, %84 : vector<34x128xf32>
    %c0_69 = arith.constant 0 : index
    %c0_70 = arith.constant 0 : index
    %86 = vector.load %arg8[%c0_69, %c0_70] : memref<1x128xf32, #tpu.memory_space<vmem>>, vector<1x128xf32>
    %87 = vector.broadcast %86 : vector<1x128xf32> to vector<34x128xf32>
    %88 = arith.addf %85, %87 : vector<34x128xf32>
    %89 = arith.mulf %88, %12 : vector<34x128xf32>
    %cst_71 = arith.constant dense<0.000000e+00> : vector<128xf32>
    %90 = vector.multi_reduction <add>, %89, %cst_71 [0] : vector<34x128xf32> to vector<128xf32>
    %91 = vector.shape_cast %90 : vector<128xf32> to vector<1x128xf32>
    %c0_72 = arith.constant 0 : index
    %c0_73 = arith.constant 0 : index
    %92 = vector.load %arg11[%c0_72, %c0_73] : memref<128x128xf32, #tpu.memory_space<vmem>>, vector<128x128xf32>
    %cst_74 = arith.constant dense<0.000000e+00> : vector<1x128xf32>
    %93 = tpu.matmul %91, %92, %cst_74 {dimension_numbers = #tpu.dot_dimension_numbers<[1], [0], [0], [1], [0, 0, 1, 1], [], []>} : vector<1x128xf32>, vector<128x128xf32>, vector<1x128xf32> -> vector<1x128xf32>
    %cst_75 = arith.constant 0.001953125 : f32
    %94 = vector.broadcast %cst_75 : f32 to vector<1x128xf32>
    %95 = arith.mulf %93, %94 : vector<1x128xf32>
    %96 = vector.broadcast %95 : vector<1x128xf32> to vector<34x128xf32>
    %97 = arith.subf %89, %96 : vector<34x128xf32>
    %98 = arith.mulf %97, %12 : vector<34x128xf32>
    %99 = arith.mulf %98, %98 : vector<34x128xf32>
    %cst_76 = arith.constant dense<0.000000e+00> : vector<128xf32>
    %100 = vector.multi_reduction <add>, %99, %cst_76 [0] : vector<34x128xf32> to vector<128xf32>
    %101 = vector.shape_cast %100 : vector<128xf32> to vector<1x128xf32>
    %c0_77 = arith.constant 0 : index
    %c0_78 = arith.constant 0 : index
    %102 = vector.load %arg11[%c0_77, %c0_78] : memref<128x128xf32, #tpu.memory_space<vmem>>, vector<128x128xf32>
    %cst_79 = arith.constant dense<0.000000e+00> : vector<1x128xf32>
    %103 = tpu.matmul %101, %102, %cst_79 {dimension_numbers = #tpu.dot_dimension_numbers<[1], [0], [0], [1], [0, 0, 1, 1], [], []>} : vector<1x128xf32>, vector<128x128xf32>, vector<1x128xf32> -> vector<1x128xf32>
    %cst_80 = arith.constant 0.001953125 : f32
    %104 = vector.broadcast %cst_80 : f32 to vector<1x128xf32>
    %105 = arith.mulf %103, %104 : vector<1x128xf32>
    %c0_81 = arith.constant 0 : index
    %c0_82 = arith.constant 0 : index
    %106 = vector.load %arg9[%c0_81, %c0_82] : memref<1x128xf32, #tpu.memory_space<vmem>>, vector<1x128xf32>
    %cst_83 = arith.constant 9.99999974E-6 : f32
    %107 = vector.broadcast %cst_83 : f32 to vector<1x128xf32>
    %108 = arith.addf %105, %107 : vector<1x128xf32>
    %109 = math.rsqrt %108 : vector<1x128xf32>
    %110 = arith.mulf %106, %109 : vector<1x128xf32>
    %111 = vector.broadcast %110 : vector<1x128xf32> to vector<34x128xf32>
    %112 = arith.mulf %98, %111 : vector<34x128xf32>
    %c0_84 = arith.constant 0 : index
    %c0_85 = arith.constant 0 : index
    %113 = vector.load %arg10[%c0_84, %c0_85] : memref<1x128xf32, #tpu.memory_space<vmem>>, vector<1x128xf32>
    %114 = vector.broadcast %113 : vector<1x128xf32> to vector<34x128xf32>
    %115 = arith.addf %112, %114 : vector<34x128xf32>
    %116 = vector.extract_strided_slice %11 {offsets = [1, 0], sizes = [34, 64], strides = [1, 1]} : vector<36x64xf32> to vector<34x64xf32>
    %c0_86 = arith.constant 0 : index
    %c0_87 = arith.constant 0 : index
    %117 = vector.load %arg12[%c0_86, %c0_87] : memref<64x128xf32, #tpu.memory_space<vmem>>, vector<64x128xf32>
    %cst_88 = arith.constant dense<0.000000e+00> : vector<34x128xf32>
    %118 = tpu.matmul %116, %117, %cst_88 {dimension_numbers = #tpu.dot_dimension_numbers<[1], [0], [0], [1], [0, 0, 1, 1], [], []>} : vector<34x64xf32>, vector<64x128xf32>, vector<34x128xf32> -> vector<34x128xf32>
    %119 = arith.addf %115, %118 : vector<34x128xf32>
    %cst_89 = arith.constant 0.000000e+00 : f32
    %120 = vector.broadcast %cst_89 : f32 to vector<34x128xf32>
    %121 = arith.cmpf oge, %119, %120 : vector<34x128xf32>
    %cst_90 = arith.constant 0.00999999977 : f32
    %122 = vector.broadcast %cst_90 : f32 to vector<34x128xf32>
    %123 = arith.mulf %122, %119 : vector<34x128xf32>
    %124 = arith.select %121, %119, %123 : vector<34x128xi1>, vector<34x128xf32>
    %125 = vector.extract_strided_slice %124 {offsets = [0, 0], sizes = [16, 128], strides = [1, 1]} : vector<34x128xf32> to vector<16x128xf32>
    %c0_91 = arith.constant 0 : index
    %c0_92 = arith.constant 0 : index
    %c0_93 = arith.constant 0 : index
    %126 = vector.load %arg13[%c0_91, %c0_92, %c0_93] : memref<2x16x128xf32, #tpu.memory_space<vmem>>, vector<1x16x128xf32>
    %127 = vector.shape_cast %126 : vector<1x16x128xf32> to vector<16x128xf32>
    %128 = vector.shape_cast %125 : vector<16x128xf32> to vector<1x16x128xf32>
    tpu.vector_store %arg13[%c0_91, %c0_92, %c0_93], %128 {strides = array<i32>} : memref<2x16x128xf32, #tpu.memory_space<vmem>>, vector<1x16x128xf32>,
    %129 = vector.extract_strided_slice %124 {offsets = [18, 0], sizes = [16, 128], strides = [1, 1]} : vector<34x128xf32> to vector<16x128xf32>
    %c1_94 = arith.constant 1 : index
    %c0_95 = arith.constant 0 : index
    %c0_96 = arith.constant 0 : index
    %130 = vector.load %arg13[%c1_94, %c0_95, %c0_96] : memref<2x16x128xf32, #tpu.memory_space<vmem>>, vector<1x16x128xf32>
    %131 = vector.shape_cast %130 : vector<1x16x128xf32> to vector<16x128xf32>
    %132 = vector.shape_cast %129 : vector<16x128xf32> to vector<1x16x128xf32>
    tpu.vector_store %arg13[%c1_94, %c0_95, %c0_96], %132 {strides = array<i32>} : memref<2x16x128xf32, #tpu.memory_space<vmem>>, vector<1x16x128xf32>,
    return
  }
  func.func @transform_0(%arg0: i32) -> (i32, i32, i32) {
    %c0_i32 = arith.constant 0 : i32
    %c0_i32_0 = arith.constant 0 : i32
    %c0_i32_1 = arith.constant 0 : i32
    %c0_i32_2 = arith.constant 0 : i32
    return %c0_i32, %c0_i32_0, %c0_i32_1 : i32, i32, i32
  }
  func.func @transform_1(%arg0: i32) -> (i32, i32) {
    %c0_i32 = arith.constant 0 : i32
    %c0_i32_0 = arith.constant 0 : i32
    %c0_i32_1 = arith.constant 0 : i32
    return %c0_i32, %c0_i32_0 : i32, i32
  }
  func.func @transform_2(%arg0: i32) -> (i32, i32, i32) {
    %c0_i32 = arith.constant 0 : i32
    %c0_i32_0 = arith.constant 0 : i32
    %c0_i32_1 = arith.constant 0 : i32
    %c0_i32_2 = arith.constant 0 : i32
    return %c0_i32, %c0_i32_0, %c0_i32_1 : i32, i32, i32
  }
  func.func @transform_3(%arg0: i32) -> (i32, i32) {
    %c0_i32 = arith.constant 0 : i32
    %c0_i32_0 = arith.constant 0 : i32
    %c0_i32_1 = arith.constant 0 : i32
    return %c0_i32, %c0_i32_0 : i32, i32
  }
  func.func @transform_4(%arg0: i32) -> (i32, i32) {
    %c0_i32 = arith.constant 0 : i32
    %c0_i32_0 = arith.constant 0 : i32
    %c0_i32_1 = arith.constant 0 : i32
    return %c0_i32, %c0_i32_0 : i32, i32
  }
  func.func @transform_5(%arg0: i32) -> (i32, i32) {
    %c0_i32 = arith.constant 0 : i32
    %c0_i32_0 = arith.constant 0 : i32
    %c0_i32_1 = arith.constant 0 : i32
    return %c0_i32, %c0_i32_0 : i32, i32
  }
  func.func @transform_6(%arg0: i32) -> (i32, i32, i32) {
    %c0_i32 = arith.constant 0 : i32
    %c0_i32_0 = arith.constant 0 : i32
    %c0_i32_1 = arith.constant 0 : i32
    %c0_i32_2 = arith.constant 0 : i32
    return %c0_i32, %c0_i32_0, %c0_i32_1 : i32, i32, i32
  }
  func.func @transform_7(%arg0: i32) -> (i32, i32) {
    %c0_i32 = arith.constant 0 : i32
    %c0_i32_0 = arith.constant 0 : i32
    %c0_i32_1 = arith.constant 0 : i32
    return %c0_i32, %c0_i32_0 : i32, i32
  }
  func.func @transform_8(%arg0: i32) -> (i32, i32) {
    %c0_i32 = arith.constant 0 : i32
    %c0_i32_0 = arith.constant 0 : i32
    %c0_i32_1 = arith.constant 0 : i32
    return %c0_i32, %c0_i32_0 : i32, i32
  }
  func.func @transform_9(%arg0: i32) -> (i32, i32) {
    %c0_i32 = arith.constant 0 : i32
    %c0_i32_0 = arith.constant 0 : i32
    %c0_i32_1 = arith.constant 0 : i32
    return %c0_i32, %c0_i32_0 : i32, i32
  }
  func.func @transform_10(%arg0: i32) -> (i32, i32) {
    %c0_i32 = arith.constant 0 : i32
    %c0_i32_0 = arith.constant 0 : i32
    %c0_i32_1 = arith.constant 0 : i32
    return %c0_i32, %c0_i32_0 : i32, i32
  }
  func.func @transform_11(%arg0: i32) -> (i32, i32) {
    %c0_i32 = arith.constant 0 : i32
    %c0_i32_0 = arith.constant 0 : i32
    %c0_i32_1 = arith.constant 0 : i32
    return %c0_i32, %c0_i32_0 : i32, i32
  }
  func.func @transform_12(%arg0: i32) -> (i32, i32, i32) {
    %c0_i32 = arith.constant 0 : i32
    %c0_i32_0 = arith.constant 0 : i32
    %c0_i32_1 = arith.constant 0 : i32
    %c0_i32_2 = arith.constant 0 : i32
    return %c0_i32, %c0_i32_0, %c0_i32_1 : i32, i32, i32
  }
}

</mosaic_0001>

<bundles_post_ra>
// kernel: tpu_custom_call.1
= control target key start
LH: loop header
LB: loop body
LE: loop exit
PB: predicated region body
PF: predicated region fallthrough
CT: control target
= control target key end

     0   :  { %17 = vsyncpa [#allocation5], 0  ;;  %s1514_s0 = inlined_call_operand.hbm [shape: f32[2,16,64], index: 0, kind: input, shape index: {}]   ;;  %s1515_s1 = inlined_call_operand.hbm [shape: f32[34,128], index: 1, kind: input, shape index: {}]   ;;  %s1516_s2 = inlined_call_operand.hbm [shape: f32[3,64,128], index: 2, kind: input, shape index: {}]   ;;  %s1517_s3 = inlined_call_operand.vmem [shape: f32[1,128], index: 3, kind: input, shape index: {}]   ;;  %s1518_s4 = inlined_call_operand.vmem [shape: f32[1,128], index: 4, kind: input, shape index: {}]   ;;  %s1519_s5 = inlined_call_operand.vmem [shape: f32[1,128], index: 5, kind: input, shape index: {}]   ;;  %s1520_s6 = inlined_call_operand.hbm [shape: f32[3,128,128], index: 6, kind: input, shape index: {}]   ;;  %s1521_s7 = inlined_call_operand.vmem [shape: f32[1,128], index: 7, kind: input, shape index: {}]   ;;  %s1522_s8 = inlined_call_operand.vmem [shape: f32[1,128], index: 8, kind: input, shape index: {}]   ;;  %s1523_s9 = inlined_call_operand.vmem [shape: f32[1,128], index: 9, kind: input, shape index: {}]   ;;  %s1524_s10 = inlined_call_operand.hbm [shape: f32[128,128], index: 10, kind: input, shape index: {}]   ;;  %s1525_s11 = inlined_call_operand.hbm [shape: f32[64,128], index: 11, kind: input, shape index: {}]   ;;  %s1526_s12 = inlined_call_operand.hbm [shape: f32[2,16,128], index: 12, kind: output, shape index: {}]  }
   0x1   :  { %18 = vsyncpa [#allocation8], 0 }
   0x2   :  { %19 = vsyncpa [#allocation11], 0 }
   0x3   :  { %20 = vsyncpa [#allocation14], 0 }
   0x4   :  { %21 = vsyncpa [#allocation6], 0  ;;  %s39_s23 = sshll.u32 %s1515_s1, 4  ;;  %s1152_s24 = smov [#allocation7]   ;;  %s40_s23 = int_to_ptr.hbm [resolvable:$true] %s39_s23 }
   0x5   :  { %s41_s25 = sshll.u32 %s1152_s24, 4  ;;  %s71_s28 = sshll.u32 %s1520_s6, 4  ;;  %s42_s25 = int_to_ptr.vmem [resolvable:$true] %s41_s25  ;;  %s72_s28 = int_to_ptr.hbm [resolvable:$true] %s71_s28 }
   0x6   :  { %s1153_s29 = smov 128   ;;  %s1154_s30 = smov 8  }
   0x7   :  { %47 = dma.hbm_to_vmem [thread:$0]  %s40_s23, 640, %s42_s25, [#allocation8], %s1153_s29, %s1153_s29, %s1154_s30  }
   0x8   :  { %s1155_s13 = smov [#allocation10]   ;;  %s26_s1 = sshll.u32 %s1514_s0, 4  ;;  %s27_s1 = int_to_ptr.hbm [resolvable:$true] %s26_s1 }
   0x9   :  { %s73_s14 = sshll.u32 %s1155_s13, 4  ;;  %s52_s18 = sshll.u32 %s1516_s2, 4  ;;  %s74_s14 = int_to_ptr.vmem [resolvable:$true] %s73_s14  ;;  %s53_s18 = int_to_ptr.hbm [resolvable:$true] %s52_s18 }
   0xa   :  { %79 = dma.hbm_to_vmem [thread:$0]  %s72_s28, 6144, %s74_s14, [#allocation11], %s1153_s29, %s1153_s29, %s1154_s30  }
   0xb   :  { %s1156_s19 = smov [#allocation4]   ;;  %s1157_s21 = smov [#allocation9]  }
   0xc   :  { %s28_s20 = sshll.u32 %s1156_s19, 4  ;;  %s54_s0 = sshll.u32 %s1157_s21, 4  ;;  %s29_s20 = int_to_ptr.vmem [resolvable:$true] %s28_s20  ;;  %s55_s0 = int_to_ptr.vmem [resolvable:$true] %s54_s0 }
   0xd   :  { %34 = dma.hbm_to_vmem [thread:$0]  %s27_s1, 512, %s29_s20, [#allocation5], %s1153_s29, %s1153_s29, %s1154_s30  }
   0xe   :  { %s90_s24 = sshll.u32 %s1524_s10, 4  ;;  %s103_s26 = sshll.u32 %s1525_s11, 4  ;;  %s91_s24 = int_to_ptr.hbm [resolvable:$true] %s90_s24  ;;  %s104_s26 = int_to_ptr.hbm [resolvable:$true] %s103_s26 }
   0xf   :  { %60 = dma.hbm_to_vmem [thread:$0]  %s53_s18, 3072, %s55_s0, [#allocation8], %s1153_s29, %s1153_s29, %s1154_s30  }
  0x10   :  { %s1158_s27 = smov [#allocation12]   ;;  %s1159_s13 = smov [#allocation13]  }
  0x11   :  { %s92_s28 = sshll.u32 %s1158_s27, 4  ;;  %s105_s10 = sshll.u32 %s1159_s13, 4  ;;  %s93_s28 = int_to_ptr.vmem [resolvable:$true] %s92_s28  ;;  %s106_s10 = int_to_ptr.vmem [resolvable:$true] %s105_s10 }
  0x12   :  { %98 = dma.hbm_to_vmem [thread:$0]  %s91_s24, 2048, %s93_s28, [#allocation11], %s1153_s29, %s1153_s29, %s1154_s30  }
  0x13   :  { %111 = dma.hbm_to_vmem [thread:$0]  %s104_s26, 1024, %s106_s10, [#allocation14], %s1153_s29, %s1153_s29, %s1154_s30  }
  0x14   :  { %1142 = dma.done.wait [#allocation5], 512  }
  0x15   :  { %1143 = vsyncadd [#allocation5], 4294966784 }
  0x16   :  { %1144 = dma.done.wait [#allocation8], 3712  }
  0x17   :  { %1145 = vsyncadd [#allocation8], 4294963584 }
  0x18   :  { %1146 = dma.done.wait [#allocation11], 8192  }
  0x19   :  { %1147 = vsyncadd [#allocation11], 4294959104 }
  0x1a   :  { %1148 = dma.done.wait [#allocation14], 1024  }
  0x1b   :  { %1149 = vsyncadd [#allocation14], 4294966272  ;;  %vm136_vm0 = vcmask 516096   ;;  %v1160_v0 = vmov 0.0   ;;  %v177_v1 = vld [vmem:[#allocation9 + $0x78] sm:$0xff]  ;;  %v176_v3 = vld [vmem:[#allocation9 + $0x70] sm:$0xff] }
  0x1c   :  { %137 = vst.msk [vmem:[#allocation2] sm:$0x1] %vm136_vm0, %v1160_v0  ;;  %v168_v2 = vld [vmem:[#allocation9 + $0x38] sm:$0xff]  ;;  %211 = vmatpush.msra.mxu0 %v177_v1  ;;  %v167_v4 = vld [vmem:[#allocation9 + $0x30] sm:$0xff]  ;;  %v175_v5 = vld [vmem:[#allocation9 + $0x68] sm:$0xff]  ;;  %vm141_vm1 = vcmask 523264  }
  0x1d   :  { %138 = vst.msk [vmem:[#allocation2 + $0x11] sm:$0x1] %vm136_vm0, %v1160_v0  ;;  %253 = vmatpush.msra.mxu1 %v168_v2  ;;  %v166_v6 = vld [vmem:[#allocation9 + $0x28] sm:$0xff]  ;;  %v285_v7 = vld [vmem:[#allocation9 + $0xb8] sm:$0xff]  ;;  %v284_v8 = vld [vmem:[#allocation9 + $0xb0] sm:$0xff]  ;;  %vm183_vm2 = vcmask 1046528  }
  0x1e   :  { %144 = vst.msk [vmem:[#allocation2 + $0x12] sm:$0x1] %vm136_vm0, %v1160_v0  ;;  %212 = vmatpush.msra.mxu0 %v176_v3  ;;  %948 = vmatpush.msra.mxu2 %v285_v7  ;;  %v174_v9 = vld [vmem:[#allocation9 + $0x60] sm:$0xff]  ;;  %v173_v11 = vld [vmem:[#allocation9 + $0x58] sm:$0xff]  ;;  %v283_v12 = vld [vmem:[#allocation9 + $0xa8] sm:$0xff]  ;;  %vm286_vm3 = vcmask 1045504  }
  0x1f   :  { %145 = vst.msk [vmem:[#allocation2 + $0x23] sm:$0x1] %vm136_vm0, %v1160_v0  ;;  %254 = vmatpush.msra.mxu1 %v167_v4  ;;  %v165_v10 = vld [vmem:[#allocation9 + $0x20] sm:$0xff]  ;;  %v164_v13 = vld [vmem:[#allocation9 + $0x18] sm:$0xff]  ;;  %v172_v14 = vld [vmem:[#allocation9 + $0x50] sm:$0xff]  ;;  %vm360_vm4 = vcmask 1041408  }
  0x20   :  { %504 = vst [vmem:[#allocation3] sm:$0x1] %v1160_v0  ;;  %213 = vmatpush.msra.mxu0 %v175_v5  ;;  %949 = vmatpush.msra.mxu2 %v284_v8  ;;  %v163_v15 = vld [vmem:[#allocation9 + $0x10] sm:$0xff]  ;;  %v282_v16 = vld [vmem:[#allocation9 + $0xa0] sm:$0xff]  ;;  %v139_v17 = vld [vmem:[#allocation4] sm:$0xff]  ;;  %s912_s21 = sshll.u32 %s1526_s12, 4  ;;  %s913_s21 = int_to_ptr.hbm [resolvable:$true] %s912_s21 }
  0x21   :  { %505 = vst [vmem:[#allocation3 + $0x23] sm:$0x1] %v1160_v0  ;;  %255 = vmatpush.msra.mxu1 %v166_v6  ;;  %v140_v18 = vld [vmem:[#allocation4 + $0x8] sm:$0xff]  ;;  %v171_v19 = vld [vmem:[#allocation9 + $0x48] sm:$0xff]  ;;  %v281_v20 = vld [vmem:[#allocation9 + $0x98] sm:$0xff] }
  0x22   :  { %214 = vmatpush.msra.mxu0 %v174_v9  ;;  %950 = vmatpush.msra.mxu2 %v283_v12  ;;  %142 = vst.msk [vmem:[#allocation2 + $0x1] sm:$0xff] %vm141_vm1, %v139_v17  ;;  %v147_v21 = vld [vmem:[#allocation4 + $0x10] sm:$0xff]  ;;  %v148_v22 = vld [vmem:[#allocation4 + $0x18] sm:$0xff]  ;;  %v170_v25 = vld [vmem:[#allocation9 + $0x40] sm:$0xff] }
  0x23   :  { %256 = vmatpush.msra.mxu1 %v165_v10  ;;  %143 = vst.msk [vmem:[#allocation2 + $0x9] sm:$0xff] %vm141_vm1, %v140_v18  ;;  %v162_v23 = vld [vmem:[#allocation9 + $0x8] sm:$0xff]  ;;  %v280_v24 = vld [vmem:[#allocation9 + $0x90] sm:$0xff]  ;;  %v161_v26 = vld [vmem:[#allocation9] sm:$0xff] }
  0x24   :  { %215 = vmatpush.msra.mxu0 %v173_v11  ;;  %951 = vmatpush.msra.mxu2 %v282_v16  ;;  %149 = vst.msk [vmem:[#allocation2 + $0x13] sm:$0xff] %vm141_vm1, %v147_v21  ;;  %v279_v27 = vld [vmem:[#allocation9 + $0x88] sm:$0xff]  ;;  %v278_v31 = vld [vmem:[#allocation9 + $0x80] sm:$0xff]  ;;  %v1310_v54 = vld [vmem:[#allocation12 + $0x78] sm:$0xff] }
  0x25   :  { %257 = vmatpush.msra.mxu1 %v164_v13  ;;  %150 = vst.msk [vmem:[#allocation2 + $0x1b] sm:$0xff] %vm141_vm1, %v148_v22  ;;  %385 = vmatpush.msra.mxu3 %v1310_v54  ;;  %v1314_v56 = vld [vmem:[#allocation12 + $0x70] sm:$0xff]  ;;  %v1318_v58 = vld [vmem:[#allocation12 + $0x68] sm:$0xff]  ;;  %v1322_v60 = vld [vmem:[#allocation12 + $0x60] sm:$0xff] }
  0x26   :  { %216 = vmatpush.msra.mxu0 %v172_v14  ;;  %952 = vmatpush.msra.mxu2 %v281_v20  ;;  %v1326_v61 = vld [vmem:[#allocation12 + $0x58] sm:$0xff]  ;;  %v1330_v63 = vld [vmem:[#allocation12 + $0x50] sm:$0xff]  ;;  %v1334_v0 = vld [vmem:[#allocation12 + $0x48] sm:$0xff] }
  0x27   :  { %258 = vmatpush.msra.mxu1 %v163_v15  ;;  %386 = vmatpush.msra.mxu3 %v1314_v56  ;;  %v1338_v3 = vld [vmem:[#allocation12 + $0x40] sm:$0xff]  ;;  %v1340_v4 = vld [vmem:[#allocation12 + $0x38] sm:$0xff]  ;;  %v1344_v5 = vld [vmem:[#allocation12 + $0x30] sm:$0xff] }
  0x28   :  { %217 = vmatpush.msra.mxu0 %v171_v19  ;;  %953 = vmatpush.msra.mxu2 %v280_v24  ;;  %v1348_v6 = vld [vmem:[#allocation12 + $0x28] sm:$0xff]  ;;  %v1356_v10 = vld [vmem:[#allocation12 + $0x18] sm:$0xff]  ;;  %v1368_v14 = vld [vmem:[#allocation12] sm:$0xff] }
  0x29   :  { %259 = vmatpush.msra.mxu1 %v162_v23  ;;  %v151_v28 = vld [vmem:[#allocation2] sm:$0xff]  ;;  %387 = vmatpush.msra.mxu3 %v1318_v58 }
  0x2a   :  { %218 = vmatpush.msra.mxu0 %v170_v25  ;;  %v152_v29 = vld [vmem:[#allocation2 + $0x8] sm:$0xff]  ;;  %v184_v30 = vrot.slane %v151_v28, 1  ;;  %954 = vmatpush.msra.mxu2 %v279_v27  ;;  %v287_v50 = vrot.slane %v151_v28, 2  ;;  %v1364_v13 = vld [vmem:[#allocation12 + $0x8] sm:$0xff] }
  0x2b   :  { %260 = vmatpush.msra.mxu1 %v161_v26  ;;  %v185_v32 = vrot.slane %v152_v29, 1  ;;  %v153_v33 = vld [vmem:[#allocation2 + $0x10] sm:$0xff]  ;;  %v288_v34 = vrot.slane %v152_v29, 2  ;;  %388 = vmatpush.msra.mxu3 %v1322_v60  ;;  %v966_v21 = vld [vmem:[%s1517_s3] ss:$0 sm:$0xff] }
  0x2c   :  { %933 = vmatmul.msk.f32.vlgmr.msra.gmra.mxu1 %vm141_vm1, %v151_v28  ;;  %314 = vmatpush.msrb.mxu0 %v285_v7  ;;  %v290_v35 = vrot.slane %v153_v33, 2  ;;  %v154_v37 = vld [vmem:[#allocation2 + $0x18] sm:$0xff]  ;;  %v187_v39 = vrot.slane %v153_v33, 1  ;;  %v155_v43 = vld [vmem:[#allocation2 + $0x20] sm:$0xf] }
  0x2d   :  { %v1269_v36 = vsel %vm183_vm2, %v184_v30, %v185_v32  ;;  %955 = vmatpush.msra.mxu2 %v278_v31  ;;  %v292_v40 = vrot.slane %v154_v37, 2  ;;  %v189_v44 = vrot.slane %v154_v37, 1  ;;  %v294_v45 = vrot.slane %v155_v43, 2  ;;  %389 = vmatpush.msra.mxu3 %v1326_v61 }
  0x2e   :  { %315 = vmatpush.msrb.mxu0 %v284_v8  ;;  %v291_v38 = vsel %vm286_vm3, %v288_v34, %v290_v35  ;;  %v1277_v41 = vsel %vm183_vm2, %v185_v32, %v187_v39  ;;  %v1291_v48 = vrot.slane %v155_v43, 1  ;;  %v289_v51 = vsel %vm286_vm3, %v287_v50, %v288_v34  ;;  %v1352_v8 = vld [vmem:[#allocation12 + $0x20] sm:$0xff]  ;;  %v1385_v32 = vld [vmem:[#allocation7] sm:$0xff] }
  0x2f   :  { %928 = vmatmul.msk.f32.vlgmr.msra.gmra.mxu0 %vm141_vm1, %v1269_v36  ;;  %939 = vmatmul.msk.f32.vlgmr.msra.gmra.mxu2 %vm141_vm1, %v291_v38  ;;  %v293_v42 = vsel %vm286_vm3, %v290_v35, %v292_v40  ;;  %v1285_v46 = vsel %vm183_vm2, %v187_v39, %v189_v44  ;;  %v295_v47 = vsel %vm286_vm3, %v292_v40, %v294_v45  ;;  %v1388_v35 = vld [vmem:[#allocation7 + $0x10] sm:$0xff]  ;;  %v1391_v40 = vld [vmem:[#allocation7 + $0x20] sm:$0x3] }
  0x30   :  { %316 = vmatpush.msrb.mxu0 %v283_v12  ;;  %v1296_v49 = vsel %vm183_vm2, %v189_v44, %v1291_v48  ;;  %390 = vmatpush.msra.mxu3 %v1330_v63  ;;  %v1360_v12 = vld [vmem:[#allocation12 + $0x10] sm:$0xff] }
  0x32   :  { %317 = vmatpush.msrb.mxu0 %v282_v16  ;;  %391 = vmatpush.msra.mxu3 %v1334_v0 }
  0x34   :  { %934 = vmatmul.msk.f32.gmra.mxu1 %vm141_vm1, %v152_v29  ;;  %318 = vmatpush.msrb.mxu0 %v281_v20 }
  0x35   :  { %392 = vmatpush.msra.mxu3 %v1338_v3 }
  0x36   :  { %319 = vmatpush.msrb.mxu0 %v280_v24 }
  0x37   :  { %929 = vmatmul.msk.f32.gmra.mxu0 %vm141_vm1, %v1277_v41  ;;  %940 = vmatmul.msk.f32.gmra.mxu2 %vm141_vm1, %v293_v42 }
  0x38   :  { %320 = vmatpush.msrb.mxu0 %v279_v27  ;;  %393 = vmatpush.msra.mxu3 %v1340_v4 }
  0x3a   :  { %321 = vmatpush.msrb.mxu0 %v278_v31  ;;  %394 = vmatpush.msra.mxu3 %v1344_v5  ;;  %v1383_v31 = vld [vmem:[#allocation7 + $0x8] sm:$0xff] }
  0x3c   :  { %935 = vmatmul.msk.f32.gmra.mxu1 %vm141_vm1, %v153_v33  ;;  %433 = vmatpush.msra.mxu0 %v1310_v54 }
  0x3d   :  { %395 = vmatpush.msra.mxu3 %v1348_v6 }
  0x3e   :  { %434 = vmatpush.msra.mxu0 %v1314_v56 }
  0x3f   :  { %930 = vmatmul.msk.f32.gmra.mxu0 %vm141_vm1, %v1285_v46  ;;  %941 = vmatmul.msk.f32.gmra.mxu2 %vm141_vm1, %v295_v47 }
  0x40   :  { %435 = vmatpush.msra.mxu0 %v1318_v58  ;;  %396 = vmatpush.msra.mxu3 %v1352_v8 }
  0x42   :  { %436 = vmatpush.msra.mxu0 %v1322_v60  ;;  %397 = vmatpush.msra.mxu3 %v1356_v10 }
  0x44   :  { %936 = vmatmul.msk.f32.gmra.mxu1 %vm141_vm1, %v154_v37  ;;  %437 = vmatpush.msra.mxu0 %v1326_v61 }
  0x45   :  { %398 = vmatpush.msra.mxu3 %v1360_v12 }
  0x46   :  { %438 = vmatpush.msra.mxu0 %v1330_v63 }
  0x47   :  { %931 = vmatmul.msk.f32.gmra.mxu0 %vm141_vm1, %v1296_v49  ;;  %942 = vmatmul.msk.f32.gmra.mxu2 %vm141_vm1, %v294_v45 }
  0x48   :  { %439 = vmatpush.msra.mxu0 %v1334_v0  ;;  %399 = vmatpush.msra.mxu3 %v1364_v13 }
  0x4a   :  { %440 = vmatpush.msra.mxu0 %v1338_v3  ;;  %400 = vmatpush.msra.mxu3 %v1368_v14 }
  0x4c   :  { %937 = vmatmul.msk.f32.gmra.mxu1 %vm141_vm1, %v155_v43  ;;  %441 = vmatpush.msra.mxu0 %v1340_v4  ;;  %v1395_v43 = vld [vmem:[#allocation7 + $0x18] sm:$0xff] }
  0x4e   :  { %442 = vmatpush.msra.mxu0 %v1344_v5 }
  0x4f   :  { %932 = vmatmul.msk.f32.gmra.mxu0 %vm141_vm1, %v1291_v48 }
  0x50   :  { %443 = vmatpush.msra.mxu0 %v1348_v6 }
  0x52   :  { %444 = vmatpush.msra.mxu0 %v1352_v8 }
  0x54   :  { %445 = vmatpush.msra.mxu0 %v1356_v10 }
  0x56   :  { %446 = vmatpush.msra.mxu0 %v1360_v12 }
  0x57   :  { %938 = vmatmul.msk.f32.vlgmr.msrb.gmra.mxu0 %vm141_vm1, %v289_v51 }
  0x58   :  { %447 = vmatpush.msra.mxu0 %v1364_v13 }
  0x5a   :  { %448 = vmatpush.msra.mxu0 %v1368_v14 }
  0x5c   :  { %741 = vmatpush.msrb.mxu0 %v1310_v54 }
  0x5e   :  { %742 = vmatpush.msrb.mxu0 %v1314_v56 }
  0x60   :  { %743 = vmatpush.msrb.mxu0 %v1318_v58 }
  0x62   :  { %744 = vmatpush.msrb.mxu0 %v1322_v60 }
  0x64   :  { %745 = vmatpush.msrb.mxu0 %v1326_v61 }
  0x66   :  { %746 = vmatpush.msrb.mxu0 %v1330_v63 }
  0x68   :  { %747 = vmatpush.msrb.mxu0 %v1334_v0 }
  0x6a   :  { %748 = vmatpush.msrb.mxu0 %v1338_v3 }
  0x6c   :  { %749 = vmatpush.msrb.mxu0 %v1340_v4 }
  0x6e   :  { %750 = vmatpush.msrb.mxu0 %v1344_v5 }
  0x70   :  { %751 = vmatpush.msrb.mxu0 %v1348_v6 }
  0x72   :  { %752 = vmatpush.msrb.mxu0 %v1352_v8 }
  0x74   :  { %753 = vmatpush.msrb.mxu0 %v1356_v10 }
  0x76   :  { %754 = vmatpush.msrb.mxu0 %v1360_v12 }
  0x78   :  { %755 = vmatpush.msrb.mxu0 %v1364_v13 }
  0x7a   :  { %756 = vmatpush.msrb.mxu0 %v1368_v14 }
  0xa9   :  { %v1306_v52 = vpop.f32.mrf.mxu1 }
  0xac   :  { %v1308_v53 = vpop.f32.mrf.mxu0 }
  0xad   :  { %v263_v24 = vadd.f32 %v1306_v52, %v1308_v53 }
  0xb1   :  { %v265_v55 = vpop.f32.mrf.mxu1 }
  0xb2   :  { %v326_v57 = vpop.f32.mrf.mxu2 }
  0xb4   :  { %v223_v59 = vpop.f32.mrf.mxu0 }
  0xb5   :  { %v266_v16 = vadd.f32 %v265_v55, %v223_v59 }
  0xb7   :  { %v339_v20 = vadd.f32 %v326_v57, %v266_v16 }
  0xb9   :  { %v268_v62 = vpop.f32.mrf.mxu1  ;;  %v348_v28 = vadd.f32 %v966_v21, %v339_v20 }
  0xba   :  { %v329_v2 = vpop.f32.mrf.mxu2 }
  0xbb   :  { %v353_v38 = vmul.f32 %v348_v28, %v1383_v31 }
  0xbc   :  { %v226_v1 = vpop.f32.mrf.mxu0 }
  0xbd   :  { %v269_v18 = vadd.f32 %v268_v62, %v226_v1 }
  0xbf   :  { %v340_v25 = vadd.f32 %v329_v2, %v269_v18 }
  0xc1   :  { %v271_v7 = vpop.f32.mrf.mxu1  ;;  %v349_v33 = vadd.f32 %v966_v21, %v340_v25 }
  0xc2   :  { %v332_v11 = vpop.f32.mrf.mxu2 }
  0xc3   :  { %v354_v44 = vmul.f32 %v349_v33, %v1388_v35 }
  0xc4   :  { %v229_v9 = vpop.f32.mrf.mxu0 }
  0xc5   :  { %v272_v22 = vadd.f32 %v271_v7, %v229_v9 }
  0xc7   :  { %v341_v29 = vadd.f32 %v332_v11, %v272_v22 }
  0xc9   :  { %v274_v17 = vpop.f32.mrf.mxu1  ;;  %v350_v39 = vadd.f32 %v966_v21, %v341_v29 }
  0xca   :  { %v335_v23 = vpop.f32.mrf.mxu2 }
  0xcb   :  { %v355_v50 = vmul.f32 %v350_v39, %v1395_v43 }
  0xcc   :  { %v232_v15 = vpop.f32.mrf.mxu0 }
  0xcd   :  { %v275_v19 = vadd.f32 %v274_v17, %v232_v15 }
  0xcf   :  { %v342_v26 = vadd.f32 %v335_v23, %v275_v19 }
  0xd1   :  { %v351_v37 = vadd.f32 %v966_v21, %v342_v26 }
  0xd3   :  { %v356_v47 = vmul.f32 %v351_v37, %v1391_v40 }
  0xd4   :  { %v323_v27 = vpop.f32.mrf.mxu0 }
  0xd5   :  { %v338_v30 = vadd.f32 %v323_v27, %v263_v24  ;;  %v361_v53 = vsel %vm360_vm4, %v356_v47, 0.0 }
  0xd7   :  { %v347_v34 = vadd.f32 %v966_v21, %v338_v30 }
  0xd9   :  { %v352_v42 = vmul.f32 %v347_v34, %v1385_v32 }
  0xdb   :  { %v357_v45 = vadd.f32 %v353_v38, %v352_v42 }
  0xdd   :  { %v358_v51 = vadd.f32 %v357_v45, %v354_v44 }
  0xdf   :  { %v359_v52 = vadd.f32 %v358_v51, %v355_v50 }
  0xe1   :  { %v362_v55 = vadd.f32 %v361_v53, %v359_v52  ;;  %v531_v52 = vld [vmem:[#allocation10 + $0x78] sm:$0xff]  ;;  %v530_v53 = vld [vmem:[#allocation10 + $0x70] sm:$0xff] }
  0xe2   :  { %600 = vmatpush.msrb.mxu2 %v531_v52  ;;  %v639_v52 = vld [vmem:[#allocation10 + $0x130] sm:$0xff] }
  0xe3   :  { %v363_v57 = vrot.slane %v362_v55, 4 }
  0xe4   :  { %601 = vmatpush.msrb.mxu2 %v530_v53  ;;  %v520_v53 = vld [vmem:[#allocation10 + $0x20] sm:$0xff] }
  0xe5   :  { %v364_v59 = vadd.f32 %v363_v57, %v362_v55  ;;  %v548_v55 = vld [vmem:[#allocation10 + $0xf8] sm:$0xff] }
  0xe6   :  { %v648_v57 = vld [vmem:[#allocation10 + $0x178] sm:$0xff]  ;;  %568 = vmatpush.msrb.mxu1 %v548_v55  ;;  %v538_v55 = vld [vmem:[#allocation10 + $0xa8] sm:$0xff] }
  0xe7   :  { %v365_v62 = vrot.slane %v364_v59, 2  ;;  %663 = vmatpush.msrb.mxu3 %v648_v57  ;;  %v638_v57 = vld [vmem:[#allocation10 + $0x128] sm:$0xff] }
  0xe9   :  { %v366_v1 = vadd.f32 %v365_v62, %v364_v59  ;;  %v529_v59 = vld [vmem:[#allocation10 + $0x68] sm:$0xff]  ;;  %v547_v62 = vld [vmem:[#allocation10 + $0xf0] sm:$0xff] }
  0xea   :  { %602 = vmatpush.msrb.mxu2 %v529_v59  ;;  %569 = vmatpush.msrb.mxu1 %v547_v62  ;;  %v519_v59 = vld [vmem:[#allocation10 + $0x18] sm:$0xff]  ;;  %v537_v62 = vld [vmem:[#allocation10 + $0xa0] sm:$0xff] }
  0xeb   :  { %v367_v2 = vrot.slane %v366_v1, 1 }
  0xed   :  { %v368_v7 = vadd.f32 %v367_v2, %v366_v1  ;;  %v647_v1 = vld [vmem:[#allocation10 + $0x170] sm:$0xff]  ;;  %v528_v2 = vld [vmem:[#allocation10 + $0x60] sm:$0xff] }
  0xee   :  { %664 = vmatpush.msrb.mxu3 %v647_v1  ;;  %603 = vmatpush.msrb.mxu2 %v528_v2  ;;  %v637_v1 = vld [vmem:[#allocation10 + $0x120] sm:$0xff]  ;;  %v518_v2 = vld [vmem:[#allocation10 + $0x10] sm:$0xff] }
  0xef   :  { %401 = vmatmul.f32.vlgmr.msra.gmra.mxu3 %v368_v7  ;;  %v546_v7 = vld [vmem:[#allocation10 + $0xe8] sm:$0xff] }
  0xf0   :  { %570 = vmatpush.msrb.mxu1 %v546_v7  ;;  %v536_v7 = vld [vmem:[#allocation10 + $0x98] sm:$0xff] }
 0x172   :  { %v402_v9 = vpop.f32.mrf.mxu3 }
 0x173   :  { %v405_v11 = vmul.f32 0.001953125, %v402_v9  ;;  %v646_v9 = vld [vmem:[#allocation10 + $0x168] sm:$0xff] }
 0x174   :  { %665 = vmatpush.msrb.mxu3 %v646_v9  ;;  %v636_v9 = vld [vmem:[#allocation10 + $0x118] sm:$0xff] }
 0x175   :  { %v406_v15 = vperm.slane %v405_v11, 0  ;;  %v527_v11 = vld [vmem:[#allocation10 + $0x58] sm:$0xff] }
 0x176   :  { %604 = vmatpush.msrb.mxu2 %v527_v11 }
 0x177   :  { %v407_v16 = vsub.f32 %v352_v42, %v406_v15  ;;  %v408_v17 = vsub.f32 %v353_v38, %v406_v15  ;;  %v409_v18 = vsub.f32 %v354_v44, %v406_v15  ;;  %v410_v19 = vsub.f32 %v355_v50, %v406_v15 }
 0x178   :  { %v411_v20 = vsub.f32 %v356_v47, %v406_v15  ;;  %v545_v15 = vld [vmem:[#allocation10 + $0xe0] sm:$0xff] }
 0x179   :  { %v1412_v21 = vmul.f32 %v407_v16, %v1385_v32  ;;  %v1415_v22 = vmul.f32 %v408_v17, %v1383_v31  ;;  %v1418_v23 = vmul.f32 %v409_v18, %v1388_v35  ;;  %v1424_v25 = vmul.f32 %v410_v19, %v1395_v43  ;;  %v645_v16 = vld [vmem:[#allocation10 + $0x160] sm:$0xff]  ;;  %571 = vmatpush.msrb.mxu1 %v545_v15  ;;  %v526_v17 = vld [vmem:[#allocation10 + $0x50] sm:$0xff]  ;;  %v544_v18 = vld [vmem:[#allocation10 + $0xd8] sm:$0xff] }
 0x17a   :  { %v1421_v24 = vmul.f32 %v411_v20, %v1391_v40  ;;  %666 = vmatpush.msrb.mxu3 %v645_v16  ;;  %605 = vmatpush.msrb.mxu2 %v526_v17  ;;  %v644_v19 = vld [vmem:[#allocation10 + $0x158] sm:$0xff]  ;;  %v525_v20 = vld [vmem:[#allocation10 + $0x48] sm:$0xff]  ;;  %v535_v17 = vld [vmem:[#allocation10 + $0x90] sm:$0xff] }
 0x17b   :  { %v417_v26 = vmul.f32 %v1412_v21, %v1412_v21  ;;  %v418_v27 = vmul.f32 %v1415_v22, %v1415_v22  ;;  %v419_v28 = vmul.f32 %v1418_v23, %v1418_v23  ;;  %v420_v33 = vmul.f32 %v1424_v25, %v1424_v25  ;;  %572 = vmatpush.msrb.mxu1 %v544_v18  ;;  %v517_v15 = vld [vmem:[#allocation10 + $0x8] sm:$0xff]  ;;  %v635_v18 = vld [vmem:[#allocation10 + $0x110] sm:$0xff] }
 0x17c   :  { %v421_v30 = vmul.f32 %v1421_v24, %v1421_v24  ;;  %667 = vmatpush.msrb.mxu3 %v644_v19  ;;  %606 = vmatpush.msrb.mxu2 %v525_v20  ;;  %v516_v19 = vld [vmem:[#allocation10] sm:$0xff] }
 0x17d   :  { %v422_v29 = vadd.f32 %v418_v27, %v417_v26  ;;  %v543_v26 = vld [vmem:[#allocation10 + $0xd0] sm:$0xff] }
 0x17e   :  { %v425_v38 = vsel %vm360_vm4, %v421_v30, 0.0  ;;  %v643_v27 = vld [vmem:[#allocation10 + $0x150] sm:$0xff]  ;;  %573 = vmatpush.msrb.mxu1 %v543_v26  ;;  %v542_v30 = vld [vmem:[#allocation10 + $0xc8] sm:$0xff] }
 0x17f   :  { %v423_v34 = vadd.f32 %v422_v29, %v419_v28  ;;  %668 = vmatpush.msrb.mxu3 %v643_v27  ;;  %v524_v28 = vld [vmem:[#allocation10 + $0x40] sm:$0xff]  ;;  %v534_v26 = vld [vmem:[#allocation10 + $0x88] sm:$0xff] }
 0x180   :  { %607 = vmatpush.msrb.mxu2 %v524_v28  ;;  %574 = vmatpush.msrb.mxu1 %v542_v30  ;;  %v634_v27 = vld [vmem:[#allocation10 + $0x108] sm:$0xff]  ;;  %v633_v30 = vld [vmem:[#allocation10 + $0x100] sm:$0xff] }
 0x181   :  { %v424_v37 = vadd.f32 %v423_v34, %v420_v33  ;;  %v642_v33 = vld [vmem:[#allocation10 + $0x148] sm:$0xff] }
 0x182   :  { %669 = vmatpush.msrb.mxu3 %v642_v33 }
 0x183   :  { %v426_v39 = vadd.f32 %v425_v38, %v424_v37  ;;  %v523_v37 = vld [vmem:[#allocation10 + $0x38] sm:$0xff]  ;;  %v541_v38 = vld [vmem:[#allocation10 + $0xc0] sm:$0xff] }
 0x184   :  { %608 = vmatpush.msrb.mxu2 %v523_v37  ;;  %575 = vmatpush.msrb.mxu1 %v541_v38 }
 0x185   :  { %v427_v42 = vrot.slane %v426_v39, 4 }
 0x187   :  { %v428_v44 = vadd.f32 %v427_v42, %v426_v39  ;;  %v641_v39 = vld [vmem:[#allocation10 + $0x140] sm:$0xff] }
 0x188   :  { %670 = vmatpush.msrb.mxu3 %v641_v39 }
 0x189   :  { %v429_v45 = vrot.slane %v428_v44, 2 }
 0x18b   :  { %v430_v47 = vadd.f32 %v429_v45, %v428_v44  ;;  %v522_v44 = vld [vmem:[#allocation10 + $0x30] sm:$0xff]  ;;  %v540_v45 = vld [vmem:[#allocation10 + $0xb8] sm:$0xff] }
 0x18c   :  { %609 = vmatpush.msrb.mxu2 %v522_v44  ;;  %576 = vmatpush.msrb.mxu1 %v540_v45  ;;  %v967_v45 = vld [vmem:[%s1519_s5] ss:$0 sm:$0xff] }
 0x18d   :  { %v431_v50 = vrot.slane %v430_v47, 1 }
 0x18f   :  { %v432_v51 = vadd.f32 %v431_v50, %v430_v47  ;;  %v640_v47 = vld [vmem:[#allocation10 + $0x138] sm:$0xff]  ;;  %v521_v50 = vld [vmem:[#allocation10 + $0x28] sm:$0xff] }
 0x190   :  { %671 = vmatpush.msrb.mxu3 %v640_v47  ;;  %610 = vmatpush.msrb.mxu2 %v521_v50 }
 0x191   :  { %449 = vmatmul.f32.vlgmr.msra.gmra.mxu0 %v432_v51  ;;  %v539_v51 = vld [vmem:[#allocation10 + $0xb0] sm:$0xff] }
 0x192   :  { %577 = vmatpush.msrb.mxu1 %v539_v51  ;;  %672 = vmatpush.msrb.mxu3 %v639_v52 }
 0x193   :  { %611 = vmatpush.msrb.mxu2 %v520_v53 }
 0x194   :  { %578 = vmatpush.msrb.mxu1 %v538_v55  ;;  %673 = vmatpush.msrb.mxu3 %v638_v57 }
 0x195   :  { %612 = vmatpush.msrb.mxu2 %v519_v59 }
 0x196   :  { %579 = vmatpush.msrb.mxu1 %v537_v62  ;;  %674 = vmatpush.msrb.mxu3 %v637_v1 }
 0x197   :  { %613 = vmatpush.msrb.mxu2 %v518_v2 }
 0x198   :  { %580 = vmatpush.msrb.mxu1 %v536_v7  ;;  %675 = vmatpush.msrb.mxu3 %v636_v9 }
 0x199   :  { %614 = vmatpush.msrb.mxu2 %v517_v15 }
 0x19a   :  { %581 = vmatpush.msrb.mxu1 %v535_v17  ;;  %676 = vmatpush.msrb.mxu3 %v635_v18 }
 0x19b   :  { %615 = vmatpush.msrb.mxu2 %v516_v19 }
 0x19c   :  { %582 = vmatpush.msrb.mxu1 %v534_v26  ;;  %677 = vmatpush.msrb.mxu3 %v634_v27 }
 0x19e   :  { %678 = vmatpush.msrb.mxu3 %v633_v30 }
 0x20e   :  { %v450_v29 = vpop.f32.mrf.mxu0 }
 0x20f   :  { %v453_v34 = vmul.f32 0.001953125, %v450_v29  ;;  %v533_v29 = vld [vmem:[#allocation10 + $0x80] sm:$0xff] }
 0x210   :  { %583 = vmatpush.msrb.mxu1 %v533_v29 }
 0x211   :  { %v455_v42 = vadd.f32 1e-05, %v453_v34  ;;  %v454_v34 = vld [vmem:[%s1518_s4] sm:$0x1] }
 0x212   :  { %789 = vmatpush.msra.mxu1 %v1310_v54 }
 0x213   :  { %970 = vrsqrt.f32 %v455_v42  ;;  %vm462_vm6 = vweird.f32 %v455_v42 }
 0x214   :  { %790 = vmatpush.msra.mxu1 %v1314_v56 }
 0x216   :  { %791 = vmatpush.msra.mxu1 %v1318_v58 }
 0x218   :  { %792 = vmatpush.msra.mxu1 %v1322_v60 }
 0x219   :  { %v971_v11 = vpop.eup %970 }
 0x21a   :  { %v457_v16 = vmul.f32 %v971_v11, %v455_v42  ;;  %vm463_vm5 = vweird.f32 %v971_v11  ;;  %793 = vmatpush.msra.mxu1 %v1326_v61 }
 0x21b   :  { %vm464_vm7 = vmor %vm462_vm6, %vm463_vm5 }
 0x21c   :  { %v458_v20 = vmul.f32 %v971_v11, %v457_v16  ;;  %794 = vmatpush.msra.mxu1 %v1330_v63 }
 0x21e   :  { %v459_v28 = vmul.f32 0.5, %v458_v20  ;;  %795 = vmatpush.msra.mxu1 %v1334_v0 }
 0x220   :  { %v460_v33 = vsub.f32 1.5, %v459_v28  ;;  %796 = vmatpush.msra.mxu1 %v1338_v3 }
 0x222   :  { %v461_v37 = vmul.f32 %v971_v11, %v460_v33  ;;  %797 = vmatpush.msra.mxu1 %v1340_v4 }
 0x224   :  { %v465_v38 = vsel %vm464_vm7, %v971_v11, %v461_v37  ;;  %798 = vmatpush.msra.mxu1 %v1344_v5 }
 0x225   :  { %v466_v39 = vmul.f32 %v465_v38, %v454_v34 }
 0x226   :  { %799 = vmatpush.msra.mxu1 %v1348_v6 }
 0x227   :  { %v468_v44 = vperm.slane %v466_v39, 0 }
 0x228   :  { %800 = vmatpush.msra.mxu1 %v1352_v8 }
 0x229   :  { %v470_v47 = vmul.f32 %v468_v44, %v1412_v21  ;;  %v471_v42 = vmul.f32 %v468_v44, %v1415_v22  ;;  %v472_v54 = vmul.f32 %v468_v44, %v1418_v23  ;;  %v473_v50 = vmul.f32 %v468_v44, %v1424_v25 }
 0x22a   :  { %v474_v56 = vmul.f32 %v468_v44, %v1421_v24  ;;  %801 = vmatpush.msra.mxu1 %v1356_v10 }
 0x22b   :  { %v479_v58 = vadd.f32 %v967_v45, %v470_v47  ;;  %v480_v51 = vadd.f32 %v967_v45, %v471_v42  ;;  %v481_v52 = vadd.f32 %v967_v45, %v472_v54  ;;  %v482_v53 = vadd.f32 %v967_v45, %v473_v50 }
 0x22c   :  { %v483_v55 = vadd.f32 %v967_v45, %v474_v56  ;;  %802 = vmatpush.msra.mxu1 %v1360_v12 }
 0x22d   :  { %vm484_vm8 = vcmp.ge.f32.partialorder %v479_v58, 0.0  ;;  %vm485_vm9 = vcmp.ge.f32.partialorder %v480_v51, 0.0  ;;  %vm486_vm10 = vcmp.ge.f32.partialorder %v481_v52, 0.0  ;;  %vm487_vm11 = vcmp.ge.f32.partialorder %v482_v53, 0.0 }
 0x22e   :  { %vm488_vm12 = vcmp.ge.f32.partialorder %v483_v55, 0.0  ;;  %v489_v60 = vmul.f32 0.01, %v479_v58  ;;  %v490_v21 = vmul.f32 0.01, %v480_v51  ;;  %803 = vmatpush.msra.mxu1 %v1364_v13 }
 0x22f   :  { %v491_v22 = vmul.f32 0.01, %v481_v52  ;;  %v492_v23 = vmul.f32 0.01, %v482_v53  ;;  %v493_v24 = vmul.f32 0.01, %v483_v55 }
 0x230   :  { %v494_v61 = vsel %vm484_vm8, %v479_v58, %v489_v60  ;;  %v495_v25 = vsel %vm485_vm9, %v480_v51, %v490_v21  ;;  %804 = vmatpush.msra.mxu1 %v1368_v14  ;;  %v847_v60 = vld [vmem:[#allocation13 + $0x38] sm:$0xff]  ;;  %v846_v21 = vld [vmem:[#allocation13 + $0x30] sm:$0xff] }
 0x231   :  { %v496_v57 = vsel %vm486_vm10, %v481_v52, %v491_v22  ;;  %v497_v59 = vsel %vm487_vm11, %v482_v53, %v492_v23  ;;  %v498_v62 = vsel %vm488_vm12, %v483_v55, %v493_v24  ;;  %v499_v63 = vmul.f32 %v494_v61, %v1385_v32  ;;  %856 = vmatpush.msra.mxu2 %v847_v60  ;;  %v968_v23 = vld [vmem:[%s1521_s7] ss:$0 sm:$0xff] }
 0x232   :  { %v500_v1 = vmul.f32 %v495_v25, %v1383_v31  ;;  %v501_v2 = vmul.f32 %v496_v57, %v1388_v35  ;;  %v502_v7 = vmul.f32 %v497_v59, %v1395_v43  ;;  %v503_v0 = vmul.f32 %v498_v62, %v1391_v40  ;;  %v845_v25 = vld [vmem:[#allocation13 + $0x28] sm:$0xff]  ;;  %v844_v62 = vld [vmem:[#allocation13 + $0x20] sm:$0xff] }
 0x233   :  { %506 = vst [vmem:[#allocation3 + $0x1] sm:$0xff] %v499_v63  ;;  %857 = vmatpush.msra.mxu2 %v846_v21 }
 0x234   :  { %507 = vst [vmem:[#allocation3 + $0x9] sm:$0xff] %v500_v1 }
 0x235   :  { %508 = vst [vmem:[#allocation3 + $0x11] sm:$0xff] %v501_v2  ;;  %858 = vmatpush.msra.mxu2 %v845_v25 }
 0x236   :  { %509 = vst [vmem:[#allocation3 + $0x19] sm:$0xff] %v502_v7 }
 0x237   :  { %510 = vst [vmem:[#allocation3 + $0x21] sm:$0x3] %v503_v0  ;;  %859 = vmatpush.msra.mxu2 %v844_v62 }
 0x23a   :  { %v511_v3 = vld [vmem:[#allocation3] sm:$0xff] }
 0x23b   :  { %v554_v9 = vrot.slane %v511_v3, 1  ;;  %616 = vmatmul.f32.vlgmr.msrb.gmra.mxu2 %v511_v3  ;;  %v649_v11 = vrot.slane %v511_v3, 2  ;;  %v512_v4 = vld [vmem:[#allocation3 + $0x8] sm:$0xff] }
 0x23c   :  { %v555_v15 = vrot.slane %v512_v4, 1  ;;  %v650_v16 = vrot.slane %v512_v4, 2  ;;  %v513_v6 = vld [vmem:[#allocation3 + $0x10] sm:$0xff] }
 0x23d   :  { %v557_v8 = vrot.slane %v513_v6, 1  ;;  %v652_v10 = vrot.slane %v513_v6, 2  ;;  %v514_v12 = vld [vmem:[#allocation3 + $0x18] sm:$0xff] }
 0x23e   :  { %v556_v5 = vsel %vm183_vm2, %v554_v9, %v555_v15  ;;  %v651_v17 = vsel %vm286_vm3, %v649_v11, %v650_v16  ;;  %v559_v20 = vrot.slane %v514_v12, 1  ;;  %v654_v26 = vrot.slane %v514_v12, 2  ;;  %v515_v14 = vld [vmem:[#allocation3 + $0x20] sm:$0xf] }
 0x23f   :  { %584 = vmatmul.f32.vlgmr.msrb.gmra.mxu1 %v556_v5  ;;  %679 = vmatmul.f32.vlgmr.msrb.gmra.mxu3 %v651_v17  ;;  %v558_v18 = vsel %vm183_vm2, %v555_v15, %v557_v8  ;;  %v653_v19 = vsel %vm286_vm3, %v650_v16, %v652_v10  ;;  %v561_v28 = vrot.slane %v515_v14, 1  ;;  %v656_v29 = vrot.slane %v515_v14, 2 }
 0x240   :  { %v560_v13 = vsel %vm183_vm2, %v557_v8, %v559_v20  ;;  %v655_v27 = vsel %vm286_vm3, %v652_v10, %v654_v26 }
 0x241   :  { %v562_v30 = vsel %vm183_vm2, %v559_v20, %v561_v28  ;;  %v657_v33 = vsel %vm286_vm3, %v654_v26, %v656_v29 }
 0x243   :  { %619 = vmatmul.f32.gmra.mxu2 %v512_v4 }
 0x247   :  { %587 = vmatmul.f32.gmra.mxu1 %v558_v18  ;;  %682 = vmatmul.f32.gmra.mxu3 %v653_v19 }
 0x24b   :  { %622 = vmatmul.f32.gmra.mxu2 %v513_v6 }
 0x24f   :  { %590 = vmatmul.f32.gmra.mxu1 %v560_v13  ;;  %685 = vmatmul.f32.gmra.mxu3 %v655_v27 }
 0x253   :  { %625 = vmatmul.f32.gmra.mxu2 %v514_v12 }
 0x257   :  { %593 = vmatmul.f32.gmra.mxu1 %v562_v30  ;;  %688 = vmatmul.f32.gmra.mxu3 %v657_v33  ;;  %v842_v30 = vld [vmem:[#allocation13 + $0x10] sm:$0xff]  ;;  %v841_v33 = vld [vmem:[#allocation13 + $0x8] sm:$0xff] }
 0x25b   :  { %628 = vmatmul.f32.gmra.mxu2 %v515_v14 }
 0x25f   :  { %596 = vmatmul.f32.gmra.mxu1 %v561_v28  ;;  %691 = vmatmul.f32.gmra.mxu3 %v656_v29  ;;  %v843_v29 = vld [vmem:[#allocation13 + $0x18] sm:$0xff] }
 0x260   :  { %860 = vmatpush.msra.mxu2 %v843_v29 }
 0x262   :  { %861 = vmatpush.msra.mxu2 %v842_v30 }
 0x264   :  { %862 = vmatpush.msra.mxu2 %v841_v33 }
 0x2bc   :  { %v585_v34 = vpop.f32.mrf.mxu1 }
 0x2be   :  { %v617_v37 = vpop.f32.mrf.mxu2 }
 0x2bf   :  { %v618_v58 = vadd.f32 %v617_v37, %v585_v34  ;;  %v840_v34 = vld [vmem:[#allocation13] sm:$0xff] }
 0x2c0   :  { %863 = vmatpush.msra.mxu2 %v840_v34 }
 0x2c1   :  { %943 = vmatmul.msk.f32.vlgmr.msra.gmra.mxu2 %vm141_vm1, %v1269_v36 }
 0x2c2   :  { %v680_v38 = vpop.f32.mrf.mxu3 }
 0x2c3   :  { %v695_v22 = vadd.f32 %v680_v38, %v618_v58 }
 0x2c4   :  { %v588_v39 = vpop.f32.mrf.mxu1 }
 0x2c5   :  { %v704_v63 = vadd.f32 %v968_v23, %v695_v22 }
 0x2c6   :  { %v620_v44 = vpop.f32.mrf.mxu2 }
 0x2c7   :  { %v621_v50 = vadd.f32 %v620_v44, %v588_v39  ;;  %v709_v11 = vmul.f32 %v704_v63, %v1385_v32 }
 0x2c9   :  { %944 = vmatmul.msk.f32.gmra.mxu2 %vm141_vm1, %v1277_v41 }
 0x2ca   :  { %v683_v45 = vpop.f32.mrf.mxu3 }
 0x2cb   :  { %v696_v53 = vadd.f32 %v683_v45, %v621_v50 }
 0x2cc   :  { %v591_v47 = vpop.f32.mrf.mxu1 }
 0x2cd   :  { %v705_v57 = vadd.f32 %v968_v23, %v696_v53 }
 0x2ce   :  { %v623_v42 = vpop.f32.mrf.mxu2 }
 0x2cf   :  { %v624_v51 = vadd.f32 %v623_v42, %v591_v47  ;;  %v710_v3 = vmul.f32 %v705_v57, %v1383_v31 }
 0x2d1   :  { %v714_v5 = vadd.f32 %v710_v3, %v709_v11  ;;  %945 = vmatmul.msk.f32.gmra.mxu2 %vm141_vm1, %v1285_v46 }
 0x2d2   :  { %v686_v54 = vpop.f32.mrf.mxu3 }
 0x2d3   :  { %v697_v24 = vadd.f32 %v686_v54, %v624_v51 }
 0x2d4   :  { %v594_v56 = vpop.f32.mrf.mxu1 }
 0x2d5   :  { %v706_v1 = vadd.f32 %v968_v23, %v697_v24 }
 0x2d6   :  { %v626_v52 = vpop.f32.mrf.mxu2 }
 0x2d7   :  { %v627_v55 = vadd.f32 %v626_v52, %v594_v56  ;;  %v711_v4 = vmul.f32 %v706_v1, %v1388_v35 }
 0x2d9   :  { %v715_v8 = vadd.f32 %v714_v5, %v711_v4  ;;  %946 = vmatmul.msk.f32.gmra.mxu2 %vm141_vm1, %v1296_v49  ;;  %v969_v5 = vld [vmem:[%s1523_s9] ss:$0 sm:$0xff] }
 0x2da   :  { %v689_v61 = vpop.f32.mrf.mxu3 }
 0x2db   :  { %v698_v59 = vadd.f32 %v689_v61, %v627_v55 }
 0x2dc   :  { %v597_v2 = vpop.f32.mrf.mxu1 }
 0x2dd   :  { %v707_v9 = vadd.f32 %v968_v23, %v698_v59 }
 0x2de   :  { %v629_v7 = vpop.f32.mrf.mxu2 }
 0x2df   :  { %v630_v0 = vadd.f32 %v629_v7, %v597_v2  ;;  %v712_v17 = vmul.f32 %v707_v9, %v1395_v43  ;;  %v810_v9 = vld [vmem:[%s1522_s8] sm:$0x1]  ;;  %s1161_s8 = smov [#allocation15]  }
 0x2e0   :  { %s910_s9 = sshll.u32 %s1161_s8, 4  ;;  %s911_s9 = int_to_ptr.vmem [resolvable:$true] %s910_s9 }
 0x2e1   :  { %v716_v18 = vadd.f32 %v715_v8, %v712_v17  ;;  %947 = vmatmul.msk.f32.gmra.mxu2 %vm141_vm1, %v1291_v48 }
 0x2e2   :  { %v692_v15 = vpop.f32.mrf.mxu3 }
 0x2e3   :  { %v699_v16 = vadd.f32 %v692_v15, %v630_v0 }
 0x2e5   :  { %v708_v6 = vadd.f32 %v968_v23, %v699_v16 }
 0x2e7   :  { %v713_v10 = vmul.f32 %v708_v6, %v1391_v40 }
 0x2e9   :  { %v717_v19 = vsel %vm360_vm4, %v713_v10, 0.0 }
 0x2ea   :  { %v718_v12 = vadd.f32 %v717_v19, %v716_v18 }
 0x2ec   :  { %v719_v20 = vrot.slane %v718_v12, 4 }
 0x2ee   :  { %v720_v26 = vadd.f32 %v719_v20, %v718_v12 }
 0x2f0   :  { %v721_v13 = vrot.slane %v720_v26, 2 }
 0x2f2   :  { %v722_v27 = vadd.f32 %v721_v13, %v720_v26 }
 0x2f4   :  { %v723_v14 = vrot.slane %v722_v27, 1 }
 0x2f6   :  { %v724_v28 = vadd.f32 %v723_v14, %v722_v27 }
 0x2f8   :  { %757 = vmatmul.f32.vlgmr.msrb.gmra.mxu0 %v724_v28 }
 0x344   :  { %v865_v25 = vpop.f32.mrf.mxu2 }
 0x34c   :  { %v868_v57 = vpop.f32.mrf.mxu2 }
 0x354   :  { %v871_v63 = vpop.f32.mrf.mxu2 }
 0x35c   :  { %v874_v48 = vpop.f32.mrf.mxu2 }
 0x364   :  { %v877_v26 = vpop.f32.mrf.mxu2 }
 0x375   :  { %v758_v37 = vpop.f32.mrf.mxu0 }
 0x376   :  { %v761_v38 = vmul.f32 0.001953125, %v758_v37 }
 0x378   :  { %v762_v39 = vperm.slane %v761_v38, 0 }
 0x37a   :  { %v763_v44 = vsub.f32 %v709_v11, %v762_v39  ;;  %v764_v45 = vsub.f32 %v710_v3, %v762_v39  ;;  %v765_v47 = vsub.f32 %v711_v4, %v762_v39  ;;  %v766_v42 = vsub.f32 %v712_v17, %v762_v39 }
 0x37b   :  { %v767_v54 = vsub.f32 %v713_v10, %v762_v39 }
 0x37c   :  { %v768_v50 = vmul.f32 %v763_v44, %v1385_v32  ;;  %v769_v56 = vmul.f32 %v764_v45, %v1383_v31  ;;  %v770_v36 = vmul.f32 %v765_v47, %v1388_v35  ;;  %v771_v41 = vmul.f32 %v766_v42, %v1395_v43 }
 0x37d   :  { %v772_v58 = vmul.f32 %v767_v54, %v1391_v40 }
 0x37e   :  { %v773_v51 = vmul.f32 %v768_v50, %v768_v50  ;;  %v774_v52 = vmul.f32 %v769_v56, %v769_v56  ;;  %v775_v53 = vmul.f32 %v770_v36, %v770_v36  ;;  %v776_v60 = vmul.f32 %v771_v41, %v771_v41 }
 0x37f   :  { %v777_v46 = vmul.f32 %v772_v58, %v772_v58 }
 0x380   :  { %v778_v55 = vadd.f32 %v774_v52, %v773_v51 }
 0x381   :  { %v781_v32 = vsel %vm360_vm4, %v777_v46, 0.0 }
 0x382   :  { %v779_v21 = vadd.f32 %v778_v55, %v775_v53 }
 0x384   :  { %v780_v22 = vadd.f32 %v779_v21, %v776_v60 }
 0x386   :  { %v782_v31 = vadd.f32 %v781_v32, %v780_v22 }
 0x388   :  { %v783_v23 = vrot.slane %v782_v31, 4 }
 0x38a   :  { %v784_v35 = vadd.f32 %v783_v23, %v782_v31 }
 0x38c   :  { %v785_v40 = vrot.slane %v784_v35, 2 }
 0x38e   :  { %v786_v43 = vadd.f32 %v785_v40, %v784_v35 }
 0x390   :  { %v787_v24 = vrot.slane %v786_v43, 1 }
 0x392   :  { %v788_v61 = vadd.f32 %v787_v24, %v786_v43 }
 0x394   :  { %805 = vmatmul.f32.vlgmr.msra.gmra.mxu1 %v788_v61 }
 0x411   :  { %v806_v49 = vpop.f32.mrf.mxu1 }
 0x412   :  { %v809_v59 = vmul.f32 0.001953125, %v806_v49 }
 0x414   :  { %v811_v62 = vadd.f32 1e-05, %v809_v59 }
 0x416   :  { %972 = vrsqrt.f32 %v811_v62  ;;  %vm818_vm14 = vweird.f32 %v811_v62 }
 0x41c   :  { %v973_v1 = vpop.eup %972 }
 0x41d   :  { %v813_v2 = vmul.f32 %v973_v1, %v811_v62  ;;  %vm819_vm13 = vweird.f32 %v973_v1 }
 0x41e   :  { %vm820_vm15 = vmor %vm818_vm14, %vm819_vm13 }
 0x41f   :  { %v814_v7 = vmul.f32 %v973_v1, %v813_v2 }
 0x421   :  { %v815_v0 = vmul.f32 0.5, %v814_v7 }
 0x423   :  { %v816_v3 = vsub.f32 1.5, %v815_v0 }
 0x425   :  { %v817_v11 = vmul.f32 %v973_v1, %v816_v3 }
 0x427   :  { %v821_v4 = vsel %vm820_vm15, %v973_v1, %v817_v11 }
 0x428   :  { %v822_v15 = vmul.f32 %v821_v4, %v810_v9 }
 0x42a   :  { %v824_v16 = vperm.slane %v822_v15, 0 }
 0x42c   :  { %v826_v17 = vmul.f32 %v824_v16, %v768_v50  ;;  %v827_v6 = vmul.f32 %v824_v16, %v769_v56  ;;  %v828_v8 = vmul.f32 %v824_v16, %v770_v36  ;;  %v829_v10 = vmul.f32 %v824_v16, %v771_v41 }
 0x42d   :  { %v830_v18 = vmul.f32 %v824_v16, %v772_v58 }
 0x42e   :  { %v836_v19 = vadd.f32 %v969_v5, %v827_v6  ;;  %v837_v12 = vadd.f32 %v969_v5, %v828_v8  ;;  %v838_v20 = vadd.f32 %v969_v5, %v829_v10  ;;  %v835_v13 = vadd.f32 %v969_v5, %v826_v17 }
 0x42f   :  { %v839_v27 = vadd.f32 %v969_v5, %v830_v18 }
 0x430   :  { %v881_v14 = vadd.f32 %v868_v57, %v836_v19  ;;  %v882_v28 = vadd.f32 %v871_v63, %v837_v12  ;;  %v883_v29 = vadd.f32 %v874_v48, %v838_v20  ;;  %v880_v30 = vadd.f32 %v865_v25, %v835_v13 }
 0x431   :  { %v884_v33 = vadd.f32 %v877_v26, %v839_v27 }
 0x432   :  { %vm886_vm0 = vcmp.ge.f32.partialorder %v881_v14, 0.0  ;;  %v891_v34 = vmul.f32 0.01, %v881_v14  ;;  %vm887_vm1 = vcmp.ge.f32.partialorder %v882_v28, 0.0  ;;  %v892_v37 = vmul.f32 0.01, %v882_v28 }
 0x433   :  { %vm888_vm2 = vcmp.ge.f32.partialorder %v883_v29, 0.0  ;;  %v893_v38 = vmul.f32 0.01, %v883_v29  ;;  %vm889_vm3 = vcmp.ge.f32.partialorder %v884_v33, 0.0  ;;  %v894_v39 = vmul.f32 0.01, %v884_v33 }
 0x434   :  { %v896_v44 = vsel %vm886_vm0, %v881_v14, %v891_v34  ;;  %v897_v45 = vsel %vm887_vm1, %v882_v28, %v892_v37  ;;  %vm885_vm4 = vcmp.ge.f32.partialorder %v880_v30, 0.0  ;;  %v890_v47 = vmul.f32 0.01, %v880_v30 }
 0x435   :  { %901 = vst [vmem:[#allocation15 + $0x8] sm:$0xff] %v896_v44  ;;  %v898_v42 = vsel %vm888_vm2, %v883_v29, %v893_v38  ;;  %v899_v54 = vsel %vm889_vm3, %v884_v33, %v894_v39 }
 0x436   :  { %903 = vst [vmem:[#allocation15 + $0xe] sm:$0xfc] %v897_v45  ;;  %v895_v50 = vsel %vm885_vm4, %v880_v30, %v890_v47 }
 0x437   :  { %904 = vst [vmem:[#allocation15 + $0x16] sm:$0xff] %v898_v42 }
 0x438   :  { %905 = vst [vmem:[#allocation15 + $0x1e] sm:$0x3] %v899_v54 }
 0x439   :  { %900 = vst [vmem:[#allocation15] sm:$0xff] %v895_v50 }
 0x43a   :  { %918 = dma.vmem_to_hbm [thread:$0]  %s911_s9, 512, %s913_s21, [#allocation6], %s1153_s29, %s1153_s29, %s1154_s30  }
 0x43b   :  { %1150 = dma.done.wait [#allocation6], 512  }
 0x43c   :  { %1151 = vsyncadd [#allocation6], 4294966784 }
 0x43d   :  { %923 = vsyncpa [#allocation5], 1 }
 0x43e   :  { %924 = vsyncpa [#allocation8], 1 }
 0x43f   :  { %925 = vsyncpa [#allocation11], 1 }
 0x440   :  { %926 = vsyncpa [#allocation14], 1 }
 0x441   :  { %927 = vsyncpa [#allocation6], 1 }

</bundles_post_ra>
